<compile_context>
chip_gen: v7x
topology: tpu7x:2x2x1
jax: 0.10.0
libtpu: 0.0.40
codegen_flags: <defaults>
</compile_context>

<pallas_src>
import functools
import math

import numpy as np
import jax
import jax.numpy as jnp
from jax.experimental import pallas as pl
from jax.experimental.pallas import tpu as pltpu

# ----- small synthetic GPT-2 configuration (stand-in for the pretrained checkpoint) -----
VOCAB = 64
SEQ = 8             # tokenized prompt length
D_MODEL = 128       # self.d_model (768 in the real module; multiple of 128)
N_HEADS = 4         # head dim = 32
N_LAYERS = 2        # self.layer
D_FF = 4 * D_MODEL
BATCH = 8           # M = B*S = 64 rows; 2 row-blocks of 32 -> n_heads*Mb = 128 (lane-dense)
ROW_BLOCKS = 2
EPS = 1e-5


def _layernorm(x, g, b):
    mu = jnp.mean(x, axis=-1, keepdims=True)
    xc = x - mu
    var = jnp.mean(xc * xc, axis=-1, keepdims=True)
    return xc * jax.lax.rsqrt(var + EPS) * g + b


def gpt2_layer_kernel(h_ref, bias_ref, hkt_ref, hv_ref,
                      ln1g_ref, ln1b_ref, wqkv_ref, bqkv_ref, wo_ref, bo_ref,
                      ln2g_ref, ln2b_ref, w1_ref, b1_ref, w2_ref, b2_ref,
                      lnfg_ref, lnfb_ref,
                      out_ref, x_ref, *, n_heads):
    """One transformer layer per inner grid step; residual stream lives in x_ref (VMEM)."""
    l = pl.program_id(1)
    bf16 = jnp.bfloat16
    f32 = jnp.float32

    @pl.when(l == 0)
    def _init():
        x_ref[...] = h_ref[...]

    Mb, D = x_ref.shape                 # Mb rows of this row-block, D on the lane axis
    dh = D // n_heads
    scale = 1.0 / math.sqrt(dh)

    x = x_ref[...]                      # f32 residual

    # --- causal multi-head self-attention (pre-LN) ---
    a16 = _layernorm(x, ln1g_ref[0], ln1b_ref[0]).astype(bf16)
    q = jnp.dot(a16, wqkv_ref[0, 0], preferred_element_type=f32) + bqkv_ref[0, 0]
    k = jnp.dot(a16, wqkv_ref[0, 1], preferred_element_type=f32) + bqkv_ref[0, 1]
    v = jnp.dot(a16, wqkv_ref[0, 2], preferred_element_type=f32) + bqkv_ref[0, 2]

    hkt = hkt_ref[...]                  # (D, n_heads*Mb) bf16 head block mask (transposed)
    hv = hv_ref[...]                    # (n_heads*Mb, D) bf16 head block mask

    # K packed per head along the LANE axis in (D, hm) layout: one small (Mb,D)->(D,Mb)
    # 32-bit transpose, lane-tiled n_heads times, then masked in bf16.  (At real sizes,
    # prefer casting to bf16 before the lane tiling as well.)
    kT = jnp.transpose(k)                                            # (D, Mb) f32
    kT_pack = jnp.concatenate([kT] * n_heads, axis=1).astype(bf16) * hkt   # (D, hm) bf16

    # V packed per head along the SUBLANE axis, cast to bf16 BEFORE replication/masking.
    v16 = v.astype(bf16)
    v_pack = jnp.concatenate([v16] * n_heads, axis=0) * hv           # (hm, D) bf16

    # one full-width score matmul: s[m, h*Mb + n] = q_h[m] . k_h[n]
    s = jnp.dot(q.astype(bf16), kT_pack, preferred_element_type=f32) * scale + bias_ref[...]
    # Row max is taken across all heads (mathematically exact); the -1e30 bias guarantees
    # masked entries exponentiate to exactly 0, which the den-via-mask-matmul relies on.
    # TODO(synk): per-head segment max if trained weights ever spread heads by >~88 nats.
    s = s - jnp.max(s, axis=-1, keepdims=True)
    e16 = jnp.exp(s).astype(bf16)                                    # (Mb, hm)

    num = jnp.dot(e16, v_pack, preferred_element_type=f32)           # (Mb, D)
    den = jnp.dot(e16, hv, preferred_element_type=f32)               # per-head sums, bcast over dh lanes
    attn = num * pl.reciprocal(jnp.maximum(den, 1e-20), approx=True)

    x = x + jnp.dot(attn.astype(bf16), wo_ref[0], preferred_element_type=f32) + bo_ref[0]

    # --- GELU MLP (pre-LN) ---
    m16 = _layernorm(x, ln2g_ref[0], ln2b_ref[0]).astype(bf16)
    hmid = jax.nn.gelu(
        jnp.dot(m16, w1_ref[0], preferred_element_type=f32) + b1_ref[0],
        approximate=True)
    x = x + jnp.dot(hmid.astype(bf16), w2_ref[0], preferred_element_type=f32) + b2_ref[0]

    x_ref[...] = x

    @pl.when(l == pl.num_programs(1) - 1)
    def _final():
        out_ref[...] = _layernorm(x, lnfg_ref[...], lnfb_ref[...])   # local x, no vst->vld


def init_params(key):
    ks = jax.random.split(key, 16)
    std = 0.02
    w = lambda k, s: (std * jax.random.normal(k, s, jnp.float32)).astype(jnp.bfloat16)
    b = lambda k, s: 0.02 * jax.random.normal(k, s, jnp.float32)
    g = lambda k, s: 1.0 + 0.05 * jax.random.normal(k, s, jnp.float32)
    return {
        "wte":  std * jax.random.normal(ks[0], (VOCAB, D_MODEL), jnp.float32),
        "wpe":  std * jax.random.normal(ks[1], (SEQ, D_MODEL), jnp.float32),
        "ln1g": g(ks[2], (N_LAYERS, 1, D_MODEL)),
        "ln1b": b(ks[3], (N_LAYERS, 1, D_MODEL)),
        "wqkv": w(ks[4], (N_LAYERS, 3, D_MODEL, D_MODEL)),
        "bqkv": b(ks[5], (N_LAYERS, 3, 1, D_MODEL)),
        "wo":   w(ks[6], (N_LAYERS, D_MODEL, D_MODEL)),
        "bo":   b(ks[7], (N_LAYERS, 1, D_MODEL)),
        "ln2g": g(ks[8], (N_LAYERS, 1, D_MODEL)),
        "ln2b": b(ks[9], (N_LAYERS, 1, D_MODEL)),
        "w1":   w(ks[10], (N_LAYERS, D_MODEL, D_FF)),
        "b1":   b(ks[11], (N_LAYERS, 1, D_FF)),
        "w2":   w(ks[12], (N_LAYERS, D_FF, D_MODEL)),
        "b2":   b(ks[13], (N_LAYERS, 1, D_MODEL)),
        "lnfg": g(ks[14], (1, D_MODEL)),
        "lnfb": b(ks[15], (1, D_MODEL)),
    }


PARAM_ORDER = ("ln1g", "ln1b", "wqkv", "bqkv", "wo", "bo",
               "ln2g", "ln2b", "w1", "b1", "w2", "b2", "lnfg", "lnfb")
PER_LAYER = frozenset({"ln1g", "ln1b", "wqkv", "bqkv", "wo", "bo",
                       "ln2g", "ln2b", "w1", "b1", "w2", "b2"})


def _per_layer_spec(shape):
    nd = len(shape)
    return pl.BlockSpec((1,) + tuple(shape[1:]),
                        lambda rb, l, _nd=nd: (l,) + (0,) * (_nd - 1))


def _resident_spec(shape):
    nd = len(shape)
    return pl.BlockSpec(tuple(shape), lambda rb, l, _nd=nd: (0,) * _nd)


def _build_masks(mb, seq, n_heads, d_model):
    """Layer-invariant masks, built once on host (hoisted out of the kernel)."""
    hm = n_heads * mb
    dh = d_model // n_heads
    r = np.arange(mb)[:, None]                  # query row within block
    c = np.arange(hm)[None, :]                  # packed column = head*mb + key_row
    rk = c % mb
    valid = ((r // seq) == (rk // seq)) & ((rk % seq) <= (r % seq))   # same seq + causal
    attn_bias = np.where(valid, 0.0, -1e30).astype(np.float32)        # (mb, hm)
    prow = np.arange(hm)[:, None]
    dcol = np.arange(d_model)[None, :]
    hv = ((prow // mb) == (dcol // dh)).astype(np.float32)            # (hm, d_model)
    return (jnp.asarray(attn_bias),
            jnp.asarray(hv.T, dtype=jnp.bfloat16),                    # (d_model, hm)
            jnp.asarray(hv, dtype=jnp.bfloat16))                      # (hm, d_model)


def _pick_vmem_limit_bytes():
    """~75% of physical per-core VMEM (v5e/v6e: 128 MiB -> 96 MiB, v7x: 64 MiB -> 48 MiB)."""
    cap = None
    try:
        cap = getattr(pltpu.get_tpu_info(), "vmem_capacity_bytes", None)
    except Exception:
        cap = None
    if not cap:
        cap = 64 * 1024 * 1024
    return int(min(max(cap * 3 // 4, 32 * 1024 * 1024), 96 * 1024 * 1024))


@jax.jit
def gen_prompt_emb_forward(tokenized_prompt, params):
    """Equivalent of GenPromptEmb.forward: (B, S) int tokens -> (B, S, d_model) f32."""
    B, S = tokenized_prompt.shape
    M = B * S
    assert M % ROW_BLOCKS == 0
    Mb = M // ROW_BLOCKS
    assert Mb % S == 0 and Mb % 8 == 0          # whole sequences per row-block, sublane-aligned

    # Glue: embedding lookup (gather) outside the kernel; fold batch -> lane-dense (M, D).
    h = params["wte"][tokenized_prompt] + params["wpe"][jnp.arange(S)][None, :, :]
    h = h.reshape(M, D_MODEL).astype(jnp.float32)

    attn_bias, hmask_kt, hmask_v = _build_masks(Mb, S, N_HEADS, D_MODEL)

    in_specs = [
        pl.BlockSpec((Mb, D_MODEL), lambda rb, l: (rb, 0)),      # activations, per row-block
        _resident_spec(attn_bias.shape),                         # hoisted masks (resident)
        _resident_spec(hmask_kt.shape),
        _resident_spec(hmask_v.shape),
    ]
    for name in PARAM_ORDER:
        spec_fn = _per_layer_spec if name in PER_LAYER else _resident_spec
        in_specs.append(spec_fn(params[name].shape))

    grid_spec = pltpu.PrefetchScalarGridSpec(
        num_scalar_prefetch=0,
        grid=(ROW_BLOCKS, N_LAYERS),             # (parallel row-blocks, streamed layers)
        in_specs=in_specs,
        out_specs=pl.BlockSpec((Mb, D_MODEL), lambda rb, l: (rb, 0)),
        scratch_shapes=[pltpu.VMEM((Mb, D_MODEL), jnp.float32)],   # residual carried over layers
    )

    out = pl.pallas_call(
        functools.partial(gpt2_layer_kernel, n_heads=N_HEADS),
        out_shape=jax.ShapeDtypeStruct((M, D_MODEL), jnp.float32),
        grid_spec=grid_spec,
        compiler_params=pltpu.CompilerParams(
            # row-block axis "parallel" (v7x megacore uses the 2nd TC; weights are
            # re-streamed per core — stage via VMEM_SHARED/CMEM if that DMA ever binds),
            # layer axis "arbitrary" (carries the residual scratch).
            dimension_semantics=("parallel", "arbitrary"),
            vmem_limit_bytes=_pick_vmem_limit_bytes(),
        ),
    )(h, attn_bias, hmask_kt, hmask_v, *[params[name] for name in PARAM_ORDER])
    return out.reshape(B, S, D_MODEL)


def gen_prompt_emb_reference(tokenized_prompt, params):
    """Pure-JAX reference (per-head attention, mirrors the kernel's bf16 cast points)."""
    B, S = tokenized_prompt.shape
    bf16 = jnp.bfloat16
    dh = D_MODEL // N_HEADS
    scale = 1.0 / math.sqrt(dh)
    causal = jnp.tril(jnp.ones((S, S), bool))
    h = params["wte"][tokenized_prompt] + params["wpe"][jnp.arange(S)][None, :, :]
    h = h.astype(jnp.float32)

    def one(x):
        for l in range(N_LAYERS):
            a = _layernorm(x, params["ln1g"][l], params["ln1b"][l]).astype(bf16)
            q = jnp.dot(a, params["wqkv"][l, 0], preferred_element_type=jnp.float32) + params["bqkv"][l, 0]
            k = jnp.dot(a, params["wqkv"][l, 1], preferred_element_type=jnp.float32) + params["bqkv"][l, 1]
            v = jnp.dot(a, params["wqkv"][l, 2], preferred_element_type=jnp.float32) + params["bqkv"][l, 2]
            heads = []
            for hh in range(N_HEADS):
                qh = q[:, hh * dh:(hh + 1) * dh].astype(bf16)
                kh = k[:, hh * dh:(hh + 1) * dh].astype(bf16)
                vh = v[:, hh * dh:(hh + 1) * dh].astype(bf16)
                s = jnp.dot(qh, kh.T, preferred_element_type=jnp.float32) * scale
                s = jnp.where(causal, s, -1e30)
                p = jax.nn.softmax(s, axis=-1)
                heads.append(jnp.dot(p.astype(bf16), vh, preferred_element_type=jnp.float32))
            attn = jnp.concatenate(heads, axis=-1)
            x = x + jnp.dot(attn.astype(bf16), params["wo"][l],
                            preferred_element_type=jnp.float32) + params["bo"][l]
            m = _layernorm(x, params["ln2g"][l], params["ln2b"][l]).astype(bf16)
            hmid = jax.nn.gelu(
                jnp.dot(m, params["w1"][l], preferred_element_type=jnp.float32) + params["b1"][l],
                approximate=True)
            x = x + jnp.dot(hmid.astype(bf16), params["w2"][l],
                            preferred_element_type=jnp.float32) + params["b2"][l]
        return _layernorm(x, params["lnfg"], params["lnfb"])

    return jax.vmap(one)(h)


if __name__ == "__main__":
    key = jax.random.PRNGKey(0)
    pkey, tkey = jax.random.split(key)
    params = init_params(pkey)

    # TODO(synk): the tokenizer / prompt-string construction (_prepare_prompt), the host-side
    # generate_embeddings padding loop, and the pretrained GPT-2 checkpoint have no Pallas
    # equivalent; synthetic token ids and random bf16 weights are used instead.
    tokenized_prompt = jax.random.randint(tkey, (BATCH, SEQ), 0, VOCAB, dtype=jnp.int32)

    out = gen_prompt_emb_forward(tokenized_prompt, params)
    out = jax.block_until_ready(out)

    ref = gen_prompt_emb_reference(tokenized_prompt, params)
    assert out.shape == (BATCH, SEQ, D_MODEL), out.shape
    assert out.dtype == jnp.float32
    max_err = float(jnp.max(jnp.abs(out - ref)))
    assert jnp.allclose(out, ref, rtol=2e-2, atol=2e-2), max_err

    print("KERNEL_OK")
</pallas_src>

<mosaic_0001>
module attributes {stable_mosaic.version = 11 : i64} {
  func.func @gpt2_layer_kernel(%arg0: i32, %arg1: i32, %arg2: memref<32x128xf32, #tpu.memory_space<vmem>>, %arg3: memref<32x128xf32, #tpu.memory_space<vmem>>, %arg4: memref<128x128xbf16, #tpu.memory_space<vmem>>, %arg5: memref<128x128xbf16, #tpu.memory_space<vmem>>, %arg6: memref<1x1x128xf32, #tpu.memory_space<vmem>>, %arg7: memref<1x1x128xf32, #tpu.memory_space<vmem>>, %arg8: memref<1x3x128x128xbf16, #tpu.memory_space<vmem>>, %arg9: memref<1x3x1x128xf32, #tpu.memory_space<vmem>>, %arg10: memref<1x128x128xbf16, #tpu.memory_space<vmem>>, %arg11: memref<1x1x128xf32, #tpu.memory_space<vmem>>, %arg12: memref<1x1x128xf32, #tpu.memory_space<vmem>>, %arg13: memref<1x1x128xf32, #tpu.memory_space<vmem>>, %arg14: memref<1x128x512xbf16, #tpu.memory_space<vmem>>, %arg15: memref<1x1x512xf32, #tpu.memory_space<vmem>>, %arg16: memref<1x512x128xbf16, #tpu.memory_space<vmem>>, %arg17: memref<1x1x128xf32, #tpu.memory_space<vmem>>, %arg18: memref<1x128xf32, #tpu.memory_space<vmem>>, %arg19: memref<1x128xf32, #tpu.memory_space<vmem>>, %arg20: memref<32x128xf32, #tpu.memory_space<vmem>>, %arg21: memref<32x128xf32, #tpu.memory_space<vmem>>) attributes {dimension_semantics = [#tpu.dimension_semantics<parallel>, #tpu.dimension_semantics<arbitrary>], iteration_bounds = array<i64: 2, 2>, scalar_prefetch = 0 : i64, scratch_operands = 1 : i64, tpu.core_type = #tpu.core_type<tc>, window_params = [{transform_indices = @transform_0, window_bounds = array<i64: 32, 128>}, {pipeline_mode = #tpu.pipeline_mode<synchronous>, transform_indices = @transform_1, window_bounds = array<i64: 32, 128>}, {pipeline_mode = #tpu.pipeline_mode<synchronous>, transform_indices = @transform_2, window_bounds = array<i64: 128, 128>}, {pipeline_mode = #tpu.pipeline_mode<synchronous>, transform_indices = @transform_3, window_bounds = array<i64: 128, 128>}, {transform_indices = @transform_4, window_bounds = array<i64: 1, 1, 128>}, {transform_indices = @transform_5, window_bounds = array<i64: 1, 1, 128>}, {transform_indices = @transform_6, window_bounds = array<i64: 1, 3, 128, 128>}, {transform_indices = @transform_7, window_bounds = array<i64: 1, 3, 1, 128>}, {transform_indices = @transform_8, window_bounds = array<i64: 1, 128, 128>}, {transform_indices = @transform_9, window_bounds = array<i64: 1, 1, 128>}, {transform_indices = @transform_10, window_bounds = array<i64: 1, 1, 128>}, {transform_indices = @transform_11, window_bounds = array<i64: 1, 1, 128>}, {transform_indices = @transform_12, window_bounds = array<i64: 1, 128, 512>}, {transform_indices = @transform_13, window_bounds = array<i64: 1, 1, 512>}, {transform_indices = @transform_14, window_bounds = array<i64: 1, 512, 128>}, {transform_indices = @transform_15, window_bounds = array<i64: 1, 1, 128>}, {pipeline_mode = #tpu.pipeline_mode<synchronous>, transform_indices = @transform_16, window_bounds = array<i64: 1, 128>}, {pipeline_mode = #tpu.pipeline_mode<synchronous>, transform_indices = @transform_17, window_bounds = array<i64: 1, 128>}, {transform_indices = @transform_18, window_bounds = array<i64: 32, 128>}]} {
    %c0_i32 = arith.constant 0 : i32
    %0 = arith.cmpi eq, %arg1, %c0_i32 : i32
    %1 = arith.extui %0 : i1 to i32
    %c0_i32_0 = arith.constant 0 : i32
    %2 = arith.cmpi ne, %1, %c0_i32_0 : i32
    scf.if %2 {
      %c0_88 = arith.constant 0 : index
      %c0_89 = arith.constant 0 : index
      %144 = vector.load %arg2[%c0_88, %c0_89] : memref<32x128xf32, #tpu.memory_space<vmem>>, vector<32x128xf32>
      %c0_90 = arith.constant 0 : index
      %c0_91 = arith.constant 0 : index
      %145 = vector.load %arg21[%c0_90, %c0_91] : memref<32x128xf32, #tpu.memory_space<vmem>>, vector<32x128xf32>
      tpu.vector_store %arg21[%c0_90, %c0_91], %144 {strides = array<i32>} : memref<32x128xf32, #tpu.memory_space<vmem>>, vector<32x128xf32>,
    } else {
    }
    %c0 = arith.constant 0 : index
    %c0_1 = arith.constant 0 : index
    %3 = vector.load %arg21[%c0, %c0_1] : memref<32x128xf32, #tpu.memory_space<vmem>>, vector<32x128xf32>
    %c0_2 = arith.constant 0 : index
    %c0_3 = arith.constant 0 : index
    %c0_4 = arith.constant 0 : index
    %4 = vector.load %arg6[%c0_2, %c0_3, %c0_4] : memref<1x1x128xf32, #tpu.memory_space<vmem>>, vector<1x1x128xf32>
    %5 = vector.shape_cast %4 : vector<1x1x128xf32> to vector<1x128xf32>
    %c0_5 = arith.constant 0 : index
    %c0_6 = arith.constant 0 : index
    %c0_7 = arith.constant 0 : index
    %6 = vector.load %arg7[%c0_5, %c0_6, %c0_7] : memref<1x1x128xf32, #tpu.memory_space<vmem>>, vector<1x1x128xf32>
    %7 = vector.shape_cast %6 : vector<1x1x128xf32> to vector<1x128xf32>
    %cst = arith.constant dense<0.000000e+00> : vector<32xf32>
    %8 = vector.multi_reduction <add>, %3, %cst [1] : vector<32x128xf32> to vector<32xf32>
    %9 = vector.shape_cast %8 : vector<32xf32> to vector<32x1xf32>
    %cst_8 = arith.constant 1.280000e+02 : f32
    %10 = vector.broadcast %cst_8 : f32 to vector<32x1xf32>
    %11 = arith.divf %9, %10 : vector<32x1xf32>
    %12 = vector.broadcast %11 : vector<32x1xf32> to vector<32x128xf32>
    %13 = arith.subf %3, %12 : vector<32x128xf32>
    %14 = arith.mulf %13, %13 : vector<32x128xf32>
    %cst_9 = arith.constant dense<0.000000e+00> : vector<32xf32>
    %15 = vector.multi_reduction <add>, %14, %cst_9 [1] : vector<32x128xf32> to vector<32xf32>
    %16 = vector.shape_cast %15 : vector<32xf32> to vector<32x1xf32>
    %cst_10 = arith.constant 1.280000e+02 : f32
    %17 = vector.broadcast %cst_10 : f32 to vector<32x1xf32>
    %18 = arith.divf %16, %17 : vector<32x1xf32>
    %cst_11 = arith.constant 9.99999974E-6 : f32
    %19 = vector.broadcast %cst_11 : f32 to vector<32x1xf32>
    %20 = arith.addf %18, %19 : vector<32x1xf32>
    %21 = math.rsqrt %20 : vector<32x1xf32>
    %22 = vector.broadcast %21 : vector<32x1xf32> to vector<32x128xf32>
    %23 = arith.mulf %13, %22 : vector<32x128xf32>
    %24 = vector.broadcast %5 : vector<1x128xf32> to vector<32x128xf32>
    %25 = arith.mulf %23, %24 : vector<32x128xf32>
    %26 = vector.broadcast %7 : vector<1x128xf32> to vector<32x128xf32>
    %27 = arith.addf %25, %26 : vector<32x128xf32>
    %28 = arith.truncf %27 : vector<32x128xf32> to vector<32x128xbf16>
    %c0_12 = arith.constant 0 : index
    %c0_13 = arith.constant 0 : index
    %c0_14 = arith.constant 0 : index
    %c0_15 = arith.constant 0 : index
    %29 = vector.load %arg8[%c0_12, %c0_13, %c0_14, %c0_15] : memref<1x3x128x128xbf16, #tpu.memory_space<vmem>>, vector<1x1x128x128xbf16>
    %30 = vector.shape_cast %29 : vector<1x1x128x128xbf16> to vector<128x128xbf16>
    %cst_16 = arith.constant dense<0.000000e+00> : vector<32x128xf32>
    %31 = tpu.matmul %28, %30, %cst_16 {dimension_numbers = #tpu.dot_dimension_numbers<[1], [0], [0], [1], [0, 0, 1, 1], [], []>} : vector<32x128xbf16>, vector<128x128xbf16>, vector<32x128xf32> -> vector<32x128xf32>
    %c0_17 = arith.constant 0 : index
    %c0_18 = arith.constant 0 : index
    %c0_19 = arith.constant 0 : index
    %c0_20 = arith.constant 0 : index
    %32 = vector.load %arg9[%c0_17, %c0_18, %c0_19, %c0_20] : memref<1x3x1x128xf32, #tpu.memory_space<vmem>>, vector<1x1x1x128xf32>
    %33 = vector.shape_cast %32 : vector<1x1x1x128xf32> to vector<1x128xf32>
    %34 = vector.broadcast %33 : vector<1x128xf32> to vector<32x128xf32>
    %35 = arith.addf %31, %34 : vector<32x128xf32>
    %c0_21 = arith.constant 0 : index
    %c1 = arith.constant 1 : index
    %c0_22 = arith.constant 0 : index
    %c0_23 = arith.constant 0 : index
    %36 = vector.load %arg8[%c0_21, %c1, %c0_22, %c0_23] : memref<1x3x128x128xbf16, #tpu.memory_space<vmem>>, vector<1x1x128x128xbf16>
    %37 = vector.shape_cast %36 : vector<1x1x128x128xbf16> to vector<128x128xbf16>
    %cst_24 = arith.constant dense<0.000000e+00> : vector<32x128xf32>
    %38 = tpu.matmul %28, %37, %cst_24 {dimension_numbers = #tpu.dot_dimension_numbers<[1], [0], [0], [1], [0, 0, 1, 1], [], []>} : vector<32x128xbf16>, vector<128x128xbf16>, vector<32x128xf32> -> vector<32x128xf32>
    %c0_25 = arith.constant 0 : index
    %c1_26 = arith.constant 1 : index
    %c0_27 = arith.constant 0 : index
    %c0_28 = arith.constant 0 : index
    %39 = vector.load %arg9[%c0_25, %c1_26, %c0_27, %c0_28] : memref<1x3x1x128xf32, #tpu.memory_space<vmem>>, vector<1x1x1x128xf32>
    %40 = vector.shape_cast %39 : vector<1x1x1x128xf32> to vector<1x128xf32>
    %41 = vector.broadcast %40 : vector<1x128xf32> to vector<32x128xf32>
    %42 = arith.addf %38, %41 : vector<32x128xf32>
    %c0_29 = arith.constant 0 : index
    %c2 = arith.constant 2 : index
    %c0_30 = arith.constant 0 : index
    %c0_31 = arith.constant 0 : index
    %43 = vector.load %arg8[%c0_29, %c2, %c0_30, %c0_31] : memref<1x3x128x128xbf16, #tpu.memory_space<vmem>>, vector<1x1x128x128xbf16>
    %44 = vector.shape_cast %43 : vector<1x1x128x128xbf16> to vector<128x128xbf16>
    %cst_32 = arith.constant dense<0.000000e+00> : vector<32x128xf32>
    %45 = tpu.matmul %28, %44, %cst_32 {dimension_numbers = #tpu.dot_dimension_numbers<[1], [0], [0], [1], [0, 0, 1, 1], [], []>} : vector<32x128xbf16>, vector<128x128xbf16>, vector<32x128xf32> -> vector<32x128xf32>
    %c0_33 = arith.constant 0 : index
    %c2_34 = arith.constant 2 : index
    %c0_35 = arith.constant 0 : index
    %c0_36 = arith.constant 0 : index
    %46 = vector.load %arg9[%c0_33, %c2_34, %c0_35, %c0_36] : memref<1x3x1x128xf32, #tpu.memory_space<vmem>>, vector<1x1x1x128xf32>
    %47 = vector.shape_cast %46 : vector<1x1x1x128xf32> to vector<1x128xf32>
    %48 = vector.broadcast %47 : vector<1x128xf32> to vector<32x128xf32>
    %49 = arith.addf %45, %48 : vector<32x128xf32>
    %c0_37 = arith.constant 0 : index
    %c0_38 = arith.constant 0 : index
    %50 = vector.load %arg4[%c0_37, %c0_38] : memref<128x128xbf16, #tpu.memory_space<vmem>>, vector<128x128xbf16>
    %c0_39 = arith.constant 0 : index
    %c0_40 = arith.constant 0 : index
    %51 = vector.load %arg5[%c0_39, %c0_40] : memref<128x128xbf16, #tpu.memory_space<vmem>>, vector<128x128xbf16>
    %52 = tpu.transpose %42, [1, 0] : vector<32x128xf32> -> vector<128x32xf32>
    %53 = tpu.concatenate %52, %52, %52, %52 in 1 : vector<128x32xf32>, vector<128x32xf32>, vector<128x32xf32>, vector<128x32xf32> -> vector<128x128xf32>
    %54 = arith.truncf %53 : vector<128x128xf32> to vector<128x128xbf16>
    %55 = arith.mulf %54, %50 : vector<128x128xbf16>
    %56 = arith.truncf %49 : vector<32x128xf32> to vector<32x128xbf16>
    %57 = tpu.concatenate %56, %56, %56, %56 in 0 : vector<32x128xbf16>, vector<32x128xbf16>, vector<32x128xbf16>, vector<32x128xbf16> -> vector<128x128xbf16>
    %58 = arith.mulf %57, %51 : vector<128x128xbf16>
    %59 = arith.truncf %35 : vector<32x128xf32> to vector<32x128xbf16>
    %cst_41 = arith.constant dense<0.000000e+00> : vector<32x128xf32>
    %60 = tpu.matmul %59, %55, %cst_41 {dimension_numbers = #tpu.dot_dimension_numbers<[1], [0], [0], [1], [0, 0, 1, 1], [], []>} : vector<32x128xbf16>, vector<128x128xbf16>, vector<32x128xf32> -> vector<32x128xf32>
    %cst_42 = arith.constant 0.176776692 : f32
    %61 = vector.broadcast %cst_42 : f32 to vector<32x128xf32>
    %62 = arith.mulf %60, %61 : vector<32x128xf32>
    %c0_43 = arith.constant 0 : index
    %c0_44 = arith.constant 0 : index
    %63 = vector.load %arg3[%c0_43, %c0_44] : memref<32x128xf32, #tpu.memory_space<vmem>>, vector<32x128xf32>
    %64 = arith.addf %62, %63 : vector<32x128xf32>
    %cst_45 = arith.constant dense<0xFF800000> : vector<32xf32>
    %65 = vector.multi_reduction <maximumf>, %64, %cst_45 [1] : vector<32x128xf32> to vector<32xf32>
    %66 = vector.shape_cast %65 : vector<32xf32> to vector<32x1xf32>
    %67 = vector.broadcast %66 : vector<32x1xf32> to vector<32x128xf32>
    %68 = arith.subf %64, %67 : vector<32x128xf32>
    %69 = math.exp %68 : vector<32x128xf32>
    %70 = arith.truncf %69 : vector<32x128xf32> to vector<32x128xbf16>
    %cst_46 = arith.constant dense<0.000000e+00> : vector<32x128xf32>
    %71 = tpu.matmul %70, %58, %cst_46 {dimension_numbers = #tpu.dot_dimension_numbers<[1], [0], [0], [1], [0, 0, 1, 1], [], []>} : vector<32x128xbf16>, vector<128x128xbf16>, vector<32x128xf32> -> vector<32x128xf32>
    %cst_47 = arith.constant dense<0.000000e+00> : vector<32x128xf32>
    %72 = tpu.matmul %70, %51, %cst_47 {dimension_numbers = #tpu.dot_dimension_numbers<[1], [0], [0], [1], [0, 0, 1, 1], [], []>} : vector<32x128xbf16>, vector<128x128xbf16>, vector<32x128xf32> -> vector<32x128xf32>
    %cst_48 = arith.constant 9.99999968E-21 : f32
    %73 = vector.broadcast %cst_48 : f32 to vector<32x128xf32>
    %74 = arith.maximumf %72, %73 : vector<32x128xf32>
    %75 = tpu.reciprocal %74 {approx = true} : vector<32x128xf32> -> vector<32x128xf32>
    %76 = arith.mulf %71, %75 : vector<32x128xf32>
    %77 = arith.truncf %76 : vector<32x128xf32> to vector<32x128xbf16>
    %c0_49 = arith.constant 0 : index
    %c0_50 = arith.constant 0 : index
    %c0_51 = arith.constant 0 : index
    %78 = vector.load %arg10[%c0_49, %c0_50, %c0_51] : memref<1x128x128xbf16, #tpu.memory_space<vmem>>, vector<1x128x128xbf16>
    %79 = vector.shape_cast %78 : vector<1x128x128xbf16> to vector<128x128xbf16>
    %cst_52 = arith.constant dense<0.000000e+00> : vector<32x128xf32>
    %80 = tpu.matmul %77, %79, %cst_52 {dimension_numbers = #tpu.dot_dimension_numbers<[1], [0], [0], [1], [0, 0, 1, 1], [], []>} : vector<32x128xbf16>, vector<128x128xbf16>, vector<32x128xf32> -> vector<32x128xf32>
    %81 = arith.addf %3, %80 : vector<32x128xf32>
    %c0_53 = arith.constant 0 : index
    %c0_54 = arith.constant 0 : index
    %c0_55 = arith.constant 0 : index
    %82 = vector.load %arg11[%c0_53, %c0_54, %c0_55] : memref<1x1x128xf32, #tpu.memory_space<vmem>>, vector<1x1x128xf32>
    %83 = vector.shape_cast %82 : vector<1x1x128xf32> to vector<1x128xf32>
    %84 = vector.broadcast %83 : vector<1x128xf32> to vector<32x128xf32>
    %85 = arith.addf %81, %84 : vector<32x128xf32>
    %c0_56 = arith.constant 0 : index
    %c0_57 = arith.constant 0 : index
    %c0_58 = arith.constant 0 : index
    %86 = vector.load %arg12[%c0_56, %c0_57, %c0_58] : memref<1x1x128xf32, #tpu.memory_space<vmem>>, vector<1x1x128xf32>
    %87 = vector.shape_cast %86 : vector<1x1x128xf32> to vector<1x128xf32>
    %c0_59 = arith.constant 0 : index
    %c0_60 = arith.constant 0 : index
    %c0_61 = arith.constant 0 : index
    %88 = vector.load %arg13[%c0_59, %c0_60, %c0_61] : memref<1x1x128xf32, #tpu.memory_space<vmem>>, vector<1x1x128xf32>
    %89 = vector.shape_cast %88 : vector<1x1x128xf32> to vector<1x128xf32>
    %cst_62 = arith.constant dense<0.000000e+00> : vector<32xf32>
    %90 = vector.multi_reduction <add>, %85, %cst_62 [1] : vector<32x128xf32> to vector<32xf32>
    %91 = vector.shape_cast %90 : vector<32xf32> to vector<32x1xf32>
    %cst_63 = arith.constant 1.280000e+02 : f32
    %92 = vector.broadcast %cst_63 : f32 to vector<32x1xf32>
    %93 = arith.divf %91, %92 : vector<32x1xf32>
    %94 = vector.broadcast %93 : vector<32x1xf32> to vector<32x128xf32>
    %95 = arith.subf %85, %94 : vector<32x128xf32>
    %96 = arith.mulf %95, %95 : vector<32x128xf32>
    %cst_64 = arith.constant dense<0.000000e+00> : vector<32xf32>
    %97 = vector.multi_reduction <add>, %96, %cst_64 [1] : vector<32x128xf32> to vector<32xf32>
    %98 = vector.shape_cast %97 : vector<32xf32> to vector<32x1xf32>
    %cst_65 = arith.constant 1.280000e+02 : f32
    %99 = vector.broadcast %cst_65 : f32 to vector<32x1xf32>
    %100 = arith.divf %98, %99 : vector<32x1xf32>
    %cst_66 = arith.constant 9.99999974E-6 : f32
    %101 = vector.broadcast %cst_66 : f32 to vector<32x1xf32>
    %102 = arith.addf %100, %101 : vector<32x1xf32>
    %103 = math.rsqrt %102 : vector<32x1xf32>
    %104 = vector.broadcast %103 : vector<32x1xf32> to vector<32x128xf32>
    %105 = arith.mulf %95, %104 : vector<32x128xf32>
    %106 = vector.broadcast %87 : vector<1x128xf32> to vector<32x128xf32>
    %107 = arith.mulf %105, %106 : vector<32x128xf32>
    %108 = vector.broadcast %89 : vector<1x128xf32> to vector<32x128xf32>
    %109 = arith.addf %107, %108 : vector<32x128xf32>
    %110 = arith.truncf %109 : vector<32x128xf32> to vector<32x128xbf16>
    %c0_67 = arith.constant 0 : index
    %c0_68 = arith.constant 0 : index
    %c0_69 = arith.constant 0 : index
    %111 = vector.load %arg14[%c0_67, %c0_68, %c0_69] : memref<1x128x512xbf16, #tpu.memory_space<vmem>>, vector<1x128x512xbf16>
    %112 = vector.shape_cast %111 : vector<1x128x512xbf16> to vector<128x512xbf16>
    %cst_70 = arith.constant dense<0.000000e+00> : vector<32x512xf32>
    %113 = tpu.matmul %110, %112, %cst_70 {dimension_numbers = #tpu.dot_dimension_numbers<[1], [0], [0], [1], [0, 0, 1, 1], [], []>} : vector<32x128xbf16>, vector<128x512xbf16>, vector<32x512xf32> -> vector<32x512xf32>
    %c0_71 = arith.constant 0 : index
    %c0_72 = arith.constant 0 : index
    %c0_73 = arith.constant 0 : index
    %114 = vector.load %arg15[%c0_71, %c0_72, %c0_73] : memref<1x1x512xf32, #tpu.memory_space<vmem>>, vector<1x1x512xf32>
    %115 = vector.shape_cast %114 : vector<1x1x512xf32> to vector<1x512xf32>
    %116 = vector.broadcast %115 : vector<1x512xf32> to vector<32x512xf32>
    %117 = arith.addf %113, %116 : vector<32x512xf32>
    %118 = arith.mulf %117, %117 : vector<32x512xf32>
    %119 = arith.mulf %117, %118 : vector<32x512xf32>
    %cst_74 = arith.constant 4.471500e-02 : f32
    %120 = vector.broadcast %cst_74 : f32 to vector<32x512xf32>
    %121 = arith.mulf %120, %119 : vector<32x512xf32>
    %122 = arith.addf %117, %121 : vector<32x512xf32>
    %cst_75 = arith.constant 0.797884583 : f32
    %123 = vector.broadcast %cst_75 : f32 to vector<32x512xf32>
    %124 = arith.mulf %123, %122 : vector<32x512xf32>
    %125 = math.tanh %124 : vector<32x512xf32>
    %cst_76 = arith.constant 1.000000e+00 : f32
    %126 = vector.broadcast %cst_76 : f32 to vector<32x512xf32>
    %127 = arith.addf %126, %125 : vector<32x512xf32>
    %cst_77 = arith.constant 5.000000e-01 : f32
    %128 = vector.broadcast %cst_77 : f32 to vector<32x512xf32>
    %129 = arith.mulf %128, %127 : vector<32x512xf32>
    %130 = arith.mulf %117, %129 : vector<32x512xf32>
    %131 = arith.truncf %130 : vector<32x512xf32> to vector<32x512xbf16>
    %c0_78 = arith.constant 0 : index
    %c0_79 = arith.constant 0 : index
    %c0_80 = arith.constant 0 : index
    %132 = vector.load %arg16[%c0_78, %c0_79, %c0_80] : memref<1x512x128xbf16, #tpu.memory_space<vmem>>, vector<1x512x128xbf16>
    %133 = vector.shape_cast %132 : vector<1x512x128xbf16> to vector<512x128xbf16>
    %cst_81 = arith.constant dense<0.000000e+00> : vector<32x128xf32>
    %134 = tpu.matmul %131, %133, %cst_81 {dimension_numbers = #tpu.dot_dimension_numbers<[1], [0], [0], [1], [0, 0, 1, 1], [], []>} : vector<32x512xbf16>, vector<512x128xbf16>, vector<32x128xf32> -> vector<32x128xf32>
    %135 = arith.addf %85, %134 : vector<32x128xf32>
    %c0_82 = arith.constant 0 : index
    %c0_83 = arith.constant 0 : index
    %c0_84 = arith.constant 0 : index
    %136 = vector.load %arg17[%c0_82, %c0_83, %c0_84] : memref<1x1x128xf32, #tpu.memory_space<vmem>>, vector<1x1x128xf32>
    %137 = vector.shape_cast %136 : vector<1x1x128xf32> to vector<1x128xf32>
    %138 = vector.broadcast %137 : vector<1x128xf32> to vector<32x128xf32>
    %139 = arith.addf %135, %138 : vector<32x128xf32>
    %c0_85 = arith.constant 0 : index
    %c0_86 = arith.constant 0 : index
    %140 = vector.load %arg21[%c0_85, %c0_86] : memref<32x128xf32, #tpu.memory_space<vmem>>, vector<32x128xf32>
    tpu.vector_store %arg21[%c0_85, %c0_86], %139 {strides = array<i32>} : memref<32x128xf32, #tpu.memory_space<vmem>>, vector<32x128xf32>,
    %c1_i32 = arith.constant 1 : i32
    %141 = arith.cmpi eq, %arg1, %c1_i32 : i32
    %142 = arith.extui %141 : i1 to i32
    %c0_i32_87 = arith.constant 0 : i32
    %143 = arith.cmpi ne, %142, %c0_i32_87 : i32
    scf.if %143 {
      %c0_88 = arith.constant 0 : index
      %c0_89 = arith.constant 0 : index
      %144 = vector.load %arg18[%c0_88, %c0_89] : memref<1x128xf32, #tpu.memory_space<vmem>>, vector<1x128xf32>
      %c0_90 = arith.constant 0 : index
      %c0_91 = arith.constant 0 : index
      %145 = vector.load %arg19[%c0_90, %c0_91] : memref<1x128xf32, #tpu.memory_space<vmem>>, vector<1x128xf32>
      %cst_92 = arith.constant dense<0.000000e+00> : vector<32xf32>
      %146 = vector.multi_reduction <add>, %139, %cst_92 [1] : vector<32x128xf32> to vector<32xf32>
      %147 = vector.shape_cast %146 : vector<32xf32> to vector<32x1xf32>
      %cst_93 = arith.constant 1.280000e+02 : f32
      %148 = vector.broadcast %cst_93 : f32 to vector<32x1xf32>
      %149 = arith.divf %147, %148 : vector<32x1xf32>
      %150 = vector.broadcast %149 : vector<32x1xf32> to vector<32x128xf32>
      %151 = arith.subf %139, %150 : vector<32x128xf32>
      %152 = arith.mulf %151, %151 : vector<32x128xf32>
      %cst_94 = arith.constant dense<0.000000e+00> : vector<32xf32>
      %153 = vector.multi_reduction <add>, %152, %cst_94 [1] : vector<32x128xf32> to vector<32xf32>
      %154 = vector.shape_cast %153 : vector<32xf32> to vector<32x1xf32>
      %cst_95 = arith.constant 1.280000e+02 : f32
      %155 = vector.broadcast %cst_95 : f32 to vector<32x1xf32>
      %156 = arith.divf %154, %155 : vector<32x1xf32>
      %cst_96 = arith.constant 9.99999974E-6 : f32
      %157 = vector.broadcast %cst_96 : f32 to vector<32x1xf32>
      %158 = arith.addf %156, %157 : vector<32x1xf32>
      %159 = math.rsqrt %158 : vector<32x1xf32>
      %160 = vector.broadcast %159 : vector<32x1xf32> to vector<32x128xf32>
      %161 = arith.mulf %151, %160 : vector<32x128xf32>
      %162 = vector.broadcast %144 : vector<1x128xf32> to vector<32x128xf32>
      %163 = arith.mulf %161, %162 : vector<32x128xf32>
      %164 = vector.broadcast %145 : vector<1x128xf32> to vector<32x128xf32>
      %165 = arith.addf %163, %164 : vector<32x128xf32>
      %c0_97 = arith.constant 0 : index
      %c0_98 = arith.constant 0 : index
      %166 = vector.load %arg20[%c0_97, %c0_98] : memref<32x128xf32, #tpu.memory_space<vmem>>, vector<32x128xf32>
      tpu.vector_store %arg20[%c0_97, %c0_98], %165 {strides = array<i32>} : memref<32x128xf32, #tpu.memory_space<vmem>>, vector<32x128xf32>,
    } else {
    }
    return
  }
  func.func @transform_0(%arg0: i32, %arg1: i32) -> (i32, i32) {
    %c0_i32 = arith.constant 0 : i32
    %c0_i32_0 = arith.constant 0 : i32
    return %arg0, %c0_i32 : i32, i32
  }
  func.func @transform_1(%arg0: i32, %arg1: i32) -> (i32, i32) {
    %c0_i32 = arith.constant 0 : i32
    %c0_i32_0 = arith.constant 0 : i32
    %c0_i32_1 = arith.constant 0 : i32
    return %c0_i32, %c0_i32_0 : i32, i32
  }
  func.func @transform_2(%arg0: i32, %arg1: i32) -> (i32, i32) {
    %c0_i32 = arith.constant 0 : i32
    %c0_i32_0 = arith.constant 0 : i32
    %c0_i32_1 = arith.constant 0 : i32
    return %c0_i32, %c0_i32_0 : i32, i32
  }
  func.func @transform_3(%arg0: i32, %arg1: i32) -> (i32, i32) {
    %c0_i32 = arith.constant 0 : i32
    %c0_i32_0 = arith.constant 0 : i32
    %c0_i32_1 = arith.constant 0 : i32
    return %c0_i32, %c0_i32_0 : i32, i32
  }
  func.func @transform_4(%arg0: i32, %arg1: i32) -> (i32, i32, i32) {
    %c0_i32 = arith.constant 0 : i32
    %c0_i32_0 = arith.constant 0 : i32
    %c0_i32_1 = arith.constant 0 : i32
    return %arg1, %c0_i32, %c0_i32_0 : i32, i32, i32
  }
  func.func @transform_5(%arg0: i32, %arg1: i32) -> (i32, i32, i32) {
    %c0_i32 = arith.constant 0 : i32
    %c0_i32_0 = arith.constant 0 : i32
    %c0_i32_1 = arith.constant 0 : i32
    return %arg1, %c0_i32, %c0_i32_0 : i32, i32, i32
  }
  func.func @transform_6(%arg0: i32, %arg1: i32) -> (i32, i32, i32, i32) {
    %c0_i32 = arith.constant 0 : i32
    %c0_i32_0 = arith.constant 0 : i32
    %c0_i32_1 = arith.constant 0 : i32
    %c0_i32_2 = arith.constant 0 : i32
    return %arg1, %c0_i32, %c0_i32_0, %c0_i32_1 : i32, i32, i32, i32
  }
  func.func @transform_7(%arg0: i32, %arg1: i32) -> (i32, i32, i32, i32) {
    %c0_i32 = arith.constant 0 : i32
    %c0_i32_0 = arith.constant 0 : i32
    %c0_i32_1 = arith.constant 0 : i32
    %c0_i32_2 = arith.constant 0 : i32
    return %arg1, %c0_i32, %c0_i32_0, %c0_i32_1 : i32, i32, i32, i32
  }
  func.func @transform_8(%arg0: i32, %arg1: i32) -> (i32, i32, i32) {
    %c0_i32 = arith.constant 0 : i32
    %c0_i32_0 = arith.constant 0 : i32
    %c0_i32_1 = arith.constant 0 : i32
    return %arg1, %c0_i32, %c0_i32_0 : i32, i32, i32
  }
  func.func @transform_9(%arg0: i32, %arg1: i32) -> (i32, i32, i32) {
    %c0_i32 = arith.constant 0 : i32
    %c0_i32_0 = arith.constant 0 : i32
    %c0_i32_1 = arith.constant 0 : i32
    return %arg1, %c0_i32, %c0_i32_0 : i32, i32, i32
  }
  func.func @transform_10(%arg0: i32, %arg1: i32) -> (i32, i32, i32) {
    %c0_i32 = arith.constant 0 : i32
    %c0_i32_0 = arith.constant 0 : i32
    %c0_i32_1 = arith.constant 0 : i32
    return %arg1, %c0_i32, %c0_i32_0 : i32, i32, i32
  }
  func.func @transform_11(%arg0: i32, %arg1: i32) -> (i32, i32, i32) {
    %c0_i32 = arith.constant 0 : i32
    %c0_i32_0 = arith.constant 0 : i32
    %c0_i32_1 = arith.constant 0 : i32
    return %arg1, %c0_i32, %c0_i32_0 : i32, i32, i32
  }
  func.func @transform_12(%arg0: i32, %arg1: i32) -> (i32, i32, i32) {
    %c0_i32 = arith.constant 0 : i32
    %c0_i32_0 = arith.constant 0 : i32
    %c0_i32_1 = arith.constant 0 : i32
    return %arg1, %c0_i32, %c0_i32_0 : i32, i32, i32
  }
  func.func @transform_13(%arg0: i32, %arg1: i32) -> (i32, i32, i32) {
    %c0_i32 = arith.constant 0 : i32
    %c0_i32_0 = arith.constant 0 : i32
    %c0_i32_1 = arith.constant 0 : i32
    return %arg1, %c0_i32, %c0_i32_0 : i32, i32, i32
  }
  func.func @transform_14(%arg0: i32, %arg1: i32) -> (i32, i32, i32) {
    %c0_i32 = arith.constant 0 : i32
    %c0_i32_0 = arith.constant 0 : i32
    %c0_i32_1 = arith.constant 0 : i32
    return %arg1, %c0_i32, %c0_i32_0 : i32, i32, i32
  }
  func.func @transform_15(%arg0: i32, %arg1: i32) -> (i32, i32, i32) {
    %c0_i32 = arith.constant 0 : i32
    %c0_i32_0 = arith.constant 0 : i32
    %c0_i32_1 = arith.constant 0 : i32
    return %arg1, %c0_i32, %c0_i32_0 : i32, i32, i32
  }
  func.func @transform_16(%arg0: i32, %arg1: i32) -> (i32, i32) {
    %c0_i32 = arith.constant 0 : i32
    %c0_i32_0 = arith.constant 0 : i32
    %c0_i32_1 = arith.constant 0 : i32
    return %c0_i32, %c0_i32_0 : i32, i32
  }
  func.func @transform_17(%arg0: i32, %arg1: i32) -> (i32, i32) {
    %c0_i32 = arith.constant 0 : i32
    %c0_i32_0 = arith.constant 0 : i32
    %c0_i32_1 = arith.constant 0 : i32
    return %c0_i32, %c0_i32_0 : i32, i32
  }
  func.func @transform_18(%arg0: i32, %arg1: i32) -> (i32, i32) {
    %c0_i32 = arith.constant 0 : i32
    %c0_i32_0 = arith.constant 0 : i32
    return %arg0, %c0_i32 : i32, i32
  }
}

</mosaic_0001>

<bundles_post_ra>
// kernel: gen_prompt_emb_forward.1
= control target key start
LH: loop header
LB: loop body
LE: loop exit
PB: predicated region body
PF: predicated region fallthrough
CT: control target
= control target key end

     0   :  { %s5406_s0 = inlined_call_operand.vmem [shape: f32[64,128], index: 0, kind: input, shape index: {}]   ;;  %s5407_s1 = inlined_call_operand.vmem [shape: f32[32,128], index: 1, kind: input, shape index: {}]   ;;  %s5408_s2 = inlined_call_operand.vmem [shape: bf16[128,128], index: 2, kind: input, shape index: {}, may-alias: {2,3}]   ;;  %s5409_s3 = inlined_call_operand.vmem [shape: bf16[128,128], index: 3, kind: input, shape index: {}, may-alias: {2,3}]   ;;  %s5410_s4 = inlined_call_operand.vmem [shape: f32[2,1,128], index: 4, kind: input, shape index: {}]   ;;  %s5411_s5 = inlined_call_operand.vmem [shape: f32[2,1,128], index: 5, kind: input, shape index: {}]   ;;  %s5412_s6 = inlined_call_operand.hbm [shape: bf16[2,3,128,128], index: 6, kind: input, shape index: {}]   ;;  %s5413_s7 = inlined_call_operand.vmem [shape: f32[2,3,1,128], index: 7, kind: input, shape index: {}]   ;;  %s5414_s8 = inlined_call_operand.vmem [shape: bf16[2,128,128], index: 8, kind: input, shape index: {}]   ;;  %s5415_s9 = inlined_call_operand.vmem [shape: f32[2,1,128], index: 9, kind: input, shape index: {}]   ;;  %s5416_s10 = inlined_call_operand.vmem [shape: f32[2,1,128], index: 10, kind: input, shape index: {}]   ;;  %s5417_s11 = inlined_call_operand.vmem [shape: f32[2,1,128], index: 11, kind: input, shape index: {}]   ;;  %s5418_s12 = inlined_call_operand.vmem [shape: bf16[2,128,512], index: 12, kind: input, shape index: {}]   ;;  %s5419_s13 = inlined_call_operand.vmem [shape: f32[2,1,512], index: 13, kind: input, shape index: {}]   ;;  %s5420_s14 = inlined_call_operand.hbm [shape: bf16[2,512,128], index: 14, kind: input, shape index: {}]   ;;  %s5421_s15 = inlined_call_operand.vmem [shape: f32[2,1,128], index: 15, kind: input, shape index: {}]   ;;  %s5422_s16 = inlined_call_operand.vmem [shape: f32[1,128], index: 16, kind: input, shape index: {}]   ;;  %s5423_s17 = inlined_call_operand.vmem [shape: f32[1,128], index: 17, kind: input, shape index: {}]   ;;  %s5424_s18 = inlined_call_operand.hbm [shape: f32[64,128], index: 18, kind: output, shape index: {}]  }
   0x1   :  { %5448 = sst [smem:[#allocation28_spill]] %s5406_s0 }
   0x2   :  { %5449 = sst [smem:[#allocation29_spill]] %s5407_s1 }
   0x3   :  { %5450 = sst [smem:[#allocation30_spill]] %s5408_s2 }
   0x4   :  { %5451 = sst [smem:[#allocation31_spill]] %s5409_s3 }
   0x5   :  { %5452 = sst [smem:[#allocation32_spill]] %s5412_s6 }
   0x6   :  { %5453 = sst [smem:[#allocation33_spill]] %s5413_s7 }
   0x7   :  { %5454 = sst [smem:[#allocation34_spill]] %s5419_s13 }
   0x8   :  { %5455 = sst [smem:[#allocation35_spill]] %s5420_s14 }
   0x9   :  { %5456 = sst [smem:[#allocation36_spill]] %s5421_s15 }
   0xa   :  { %5457 = sst [smem:[#allocation37_spill]] %s5422_s16 }
   0xb   :  { %5458 = sst [smem:[#allocation38_spill]] %s5423_s17 }
   0xc   :  { %5459 = sst [smem:[#allocation39_spill]] %s5424_s18 }
   0xd   :  { %23 = vsyncpa [#allocation4], 0 }
   0xe   :  { %25 = vsyncpa [#allocation4 + $0x1], 0 }
   0xf   :  { %26 = vsyncpa [#allocation7], 0 }
  0x10   :  { %28 = vsyncpa [#allocation7 + $0x1], 0 }
  0x11   :  { %29 = vsyncpa [#allocation5], 0 }
  0x12   :  { %31 = vsyncpa [#allocation5 + $0x1], 0  ;;  %s4427_s27 = smov 0   ;;  %s4429_s28 = smov 0  }
  0x13   :  { %s4431_s29 = smov 0   ;;  %s4433_s30 = smov 0  }
  0x14   :  { %s4435_s0 = smov 0   ;;  %s4437_s19 = smov 0  }
  0x15   :  { %s4439_s1 = smov 0   ;;  %s4441_s20 = smov 0  }
  0x16   :  { %s4443_s21 = smov 0   ;;  %s4445_s22 = smov 0  }
  0x17   :  { %s4447_s2 = smov 0  }
  0x18 LB: > { %5460 = sst [smem:[#allocation12_spill]] %s4279_s27  ;;  %s3221_s23 = sadd.s32 4294967295, %s4319_s2   ;;  %s4319_s2 = sphi %s4447_s2, %s37_s2   ;;  %s4315_s22 = sphi %s4445_s22, %s5521_s22   ;;  %s4311_s21 = sphi %s4443_s21, %s5520_s21   ;;  %s4307_s20 = sphi %s4441_s20, %s5519_s20   ;;  %s4303_s1 = sphi %s4439_s1, %s5518_s1   ;;  %s4299_s19 = sphi %s4437_s19, %s5517_s19   ;;  %s4295_s0 = sphi %s4435_s0, %s5516_s0   ;;  %s4291_s30 = sphi %s4433_s30, %s5515_s30   ;;  %s4287_s29 = sphi %s4431_s29, %s5514_s29   ;;  %s4283_s28 = sphi %s4429_s28, %s5513_s28   ;;  %s4279_s27 = sphi %s4427_s27, %s5512_s27  }
  0x19   : > { %5461 = sst [smem:[#allocation13_spill]] %s4283_s28  ;;  %s3222_s24 = sadd.s32 4294967294, %s4319_s2  }
  0x1a   : > { %5462 = sst [smem:[#allocation14_spill]] %s4287_s29  ;;  %s46_s25 = sadd.s32 1, %s4311_s21 }
  0x1b   : > { %5463 = sst [smem:[#allocation15_spill]] %s4295_s0  ;;  %s49_s26 = sadd.s32 1, %s4315_s22 }
  0x1c   : > { %5464 = sst [smem:[#allocation16_spill]] %s4299_s19  ;;  %p47_p0 = scmp.ge.s32.totalorder %s46_s25, 2 }
  0x1d   : > { %5465 = sst [smem:[#allocation17_spill]] %s4307_s20  ;;  %s197_s18 = sadd.s32 1, %s4299_s19 }
  0x1e   : > { %5466 = sst [smem:[#allocation18_spill]] %s4311_s21  ;;  %p204_p1 = scmp.ne.s32.totalorder %s4299_s19, %s4295_s0 }
  0x1f   : > { %5467 = sst [smem:[#allocation19_spill]] %s4315_s22  ;;  %p205_p2 = scmp.eq.s32.totalorder %s4319_s2, 0 }
  0x20   : > { %5468 = sst [smem:[#allocation20_spill]] %s4319_s2  ;;  %s5523_s25 = smov (%p47_p0, %s46_s25), 0 }
  0x21   : > { %5469 = sst [smem:[#allocation21_spill]] %s5523_s25  ;;  %s5525_s26 = smov (!%p47_p0, %s49_s26), %s4315_s22 }
  0x22   : > { %s194_s17 = ssub.s32 %s4311_s21, %s5523_s25  ;;  %p4493_p3 = por %p205_p2, %p204_p1 }
  0x23   : > { %p51_p4 = scmp.ge.s32.totalorder %s5525_s26, 2  ;;  %p195_p5 = scmp.eq.s32.totalorder %s194_s17, 0 }
  0x24   : > { %p210_p6 = scmp.ne.s32.totalorder %s4295_s0, %s4291_s30  ;;  %p211_p7 = scmp.eq.s32.totalorder %s3221_s23, 0 }
  0x25   : > { %s5527_s26 = smov (%p51_p4, %s5525_s26), 0  ;;  %s499_s13 = sadd.s32 1, %s4287_s29 }
  0x26   : > { %5471 = sst [smem:[#allocation22_spill]] %s5527_s26  ;;  %p4503_p8 = por %p211_p7, %p210_p6 }
  0x27   : > { %s4501_s3 = scalar_select %p195_p5, %s4299_s19, %s197_s18  }
  0x28   : > { %s5473_s25 = scalar_select %p4503_p8, 1, 0 }
  0x29   : > { %5472 = sst [smem:[#allocation23_spill]] %s4501_s3  ;;  %s496_s15 = ssub.s32 %s4315_s22, %s5527_s26 }
  0x2a   : > { %p497_p9 = scmp.eq.s32.totalorder %s496_s15, 0  ;;  %p509_p10 = scmp.ne.s32.totalorder %s4287_s29, %s4283_s28 }
  0x2b   : > { %p510_p11 = scmp.eq.s32.totalorder %s3221_s23, 3  ;;  %p515_p13 = scmp.ne.s32.totalorder %s4283_s28, %s4279_s27 }
  0x2c   : > { %s4513_s17 = scalar_select %p497_p9, %s4287_s29, %s499_s13  }
  0x2d   : > { %p4515_p12 = por %p510_p11, %p509_p10  ;;  %p516_p0 = scmp.eq.s32.totalorder %s3222_s24, 3 }
  0x2e   : > { %5474 = sst [smem:[#allocation24_spill]] %s4513_s17  ;;  %p3710_p1 = scmp.lt.s32.totalorder %s4319_s2, 4 }
  0x2f   : > { %s5475_s30 = scalar_select %p4515_p12, 1, 0 }
  0x30   : > { %s4523_s18 = sand.u32 1, %s4299_s19   ;;  %p4525_p2 = por %p516_p0, %p515_p13 }
  0x31   : > { %5476 = sst [smem:[#allocation25_spill]] %s5475_s30  ;;  %s3689_s15 = smul.u32 192, %s4523_s18 }
  0x32   : > { %s5477_s3 = scalar_select %p4525_p2, 1, 0 }
  0x33   : > { %p4532_p4 = pnand %p3710_p1, %p4493_p3  ;;  %s3690_s23 = smul.u32 3072, %s4311_s21 }
  0x34   : > { %5478 = sst [smem:[#allocation26_spill]] %s5477_s3  ;;  %s5480_s6 = sld [smem:[#allocation32_spill]] }
  0x35   : > { %s576_s19 = scalar_lea.vmem [#allocation3], %s3689_s15  ;;  %s573_s16 = scalar_lea.sflag [#allocation4], %s4523_s18 }
  0x36   : > { %s583_s17 = sshll.u32 %s576_s19, 4  ;;  %p4135_p5 = pneg %p4532_p4  ;;  %s4542_s17 = int_to_ptr.vmem [resolvable:$true] %s583_s17 }
  0x3a   : > { %s4540_s22 = scalar_lea.hbm %s5480_s6, %s3690_s23  ;;  %s4138_s24 = scalar_lea.hbm %s5480_s6, 6144 }
  0x3b   : > { %s4133_s29 = scalar_lea.hbm %s4540_s22, 3072  ;;  %p4139_p9 = scmp.lt.u32.totalorder %s4540_s22, %s5480_s6 }
  0x3c   : > { %p4134_p3 = scmp.ne.s32.totalorder %s4540_s22, %s4133_s29  ;;  %p4140_p10 = scmp.lt.u32.totalorder %s4138_s24, %s4133_s29 }
  0x3d   : > { %p4142_p13 = scmp.lt.u32.totalorder %s4133_s29, %s4540_s22 }
  0x3e   : > { %p4136_p6 = pnand %p4135_p5, %p4134_p3  ;;  %p4141_p11 = por %p4140_p10, %p4139_p9 }
  0x40   : > { %p4137_p7 = pneg %p4136_p6  ;;  %p4143_p0 = por %p4142_p13, %p4141_p11 }
  0x42   : > { %p4144_p1 = pnand %p4143_p0, %p4137_p7 }
  0x44   : > { %4147 = shalt.err (!%p4144_p1)
}
  0x45   : > { %s4148_s19 = scalar_lea.vmem %s4542_s17, 3072  ;;  %s4321_s15 = smov [#allocation3]  }
  0x46   : > { %p4149_p3 = scmp.ne.s32.totalorder %s4542_s17, %s4148_s19  ;;  %s4153_s26 = sshll.u32 %s4321_s15, 4  ;;  %s4154_s26 = int_to_ptr.vmem [resolvable:$false] %s4153_s26 }
  0x47   : > { %s4155_s3 = scalar_lea.vmem %s4154_s26, 6144  ;;  %p4156_p12 = scmp.lt.s32.totalorder %s4542_s17, %s4154_s26 }
  0x48   : > { %p4151_p6 = pnand %p4149_p3, %p4135_p5  ;;  %p4157_p9 = scmp.lt.s32.totalorder %s4155_s3, %s4148_s19 }
  0x4a   : > { %p4152_p2 = pneg %p4151_p6  ;;  %p4158_p10 = por %p4157_p9, %p4156_p12 }
  0x4c   : > { %p4159_p11 = pnand %p4158_p10, %p4152_p2 }
  0x4e   : > { %4162 = shalt.err (!%p4159_p11)
}
  0x4f   : > { %s4322_s27 = smov 64   ;;  %s4323_s29 = smov 4  }
  0x50   : > { %3702 = dma.hbm_to_vmem [thread:$0]  (!%p4532_p4), %s4540_s22, 3072, %s4542_s17, %s573_s16, %s4322_s27, %s4322_s27, %s4323_s29  }
  0x51   : > { %p3229_p12 = scmp.ge.s32.totalorder %s4319_s2, 1  ;;  %p666_p2 = scmp.lt.s32.totalorder %s4319_s2, 5 }
  0x52   : > { %s3226_s23 = sshll.u32 %s4523_s18, 8  ;;  %s3403_s19 = sshll.u32 %s4311_s21, 12 }
  0x53   : > { %p4578_p7 = pnand %p3229_p12, %p666_p2  ;;  %s645_s15 = scalar_lea.vmem [#allocation6], %s3226_s23 }
  0x54   : > { %s652_s26 = sshll.u32 %s645_s15, 4  ;;  %s5482_s14 = sld [smem:[#allocation35_spill]]  ;;  %s4588_s26 = int_to_ptr.vmem [resolvable:$true] %s652_s26 }
  0x55   : > { %s642_s22 = scalar_lea.sflag [#allocation7], %s4523_s18 }
  0x5a   : > { %s4586_s30 = scalar_lea.hbm %s5482_s14, %s3403_s19  ;;  %s4168_s15 = scalar_lea.hbm %s5482_s14, 8192 }
  0x5b   : > { %s4163_s17 = scalar_lea.hbm %s4586_s30, 4096  ;;  %p4169_p3 = scmp.lt.u32.totalorder %s4586_s30, %s5482_s14 }
  0x5c   : > { %p4164_p13 = scmp.ne.s32.totalorder %s4586_s30, %s4163_s17  ;;  %p4170_p6 = scmp.lt.u32.totalorder %s4168_s15, %s4163_s17 }
  0x5d   : > { %p4172_p10 = scmp.lt.u32.totalorder %s4163_s17, %s4586_s30 }
  0x5e   : > { %p4166_p0 = pnand %p4164_p13, %p4135_p5  ;;  %p4171_p9 = por %p4170_p6, %p4169_p3 }
  0x60   : > { %p4167_p1 = pneg %p4166_p0  ;;  %p4173_p11 = por %p4172_p10, %p4171_p9 }
  0x62   : > { %p4174_p12 = pnand %p4173_p11, %p4167_p1 }
  0x64   : > { %4177 = shalt.err (!%p4174_p12)
}
  0x65   : > { %s4178_s3 = scalar_lea.vmem %s4588_s26, 4096  ;;  %s4324_s16 = smov [#allocation6]  }
  0x66   : > { %p4179_p2 = scmp.ne.s32.totalorder %s4588_s26, %s4178_s3  ;;  %s4183_s23 = sshll.u32 %s4324_s16, 4  ;;  %s4184_s23 = int_to_ptr.vmem [resolvable:$false] %s4183_s23 }
  0x67   : > { %s4185_s6 = scalar_lea.vmem %s4184_s23, 8192  ;;  %p4186_p8 = scmp.lt.s32.totalorder %s4588_s26, %s4184_s23 }
  0x68   : > { %p4181_p13 = pnand %p4179_p2, %p4135_p5  ;;  %p4187_p3 = scmp.lt.s32.totalorder %s4185_s6, %s4178_s3 }
  0x6a   : > { %p4182_p0 = pneg %p4181_p13  ;;  %p4188_p6 = por %p4187_p3, %p4186_p8 }
  0x6c   : > { %p4189_p9 = pnand %p4188_p6, %p4182_p0 }
  0x6e   : > { %4192 = shalt.err (!%p4189_p9)
}
  0x6f   : > { %3705 = dma.hbm_to_vmem [thread:$0]  (!%p4532_p4), %s4586_s30, 4096, %s4588_s26, %s642_s22, %s4322_s27, %s4322_s27, %s4323_s29  }
  0x70   : > { %670 = sbr.rel (%p4578_p7) target bundleno = 3034 (0xbda), region = 92 }
  0x77   : > { %s672_s17 = sand.u32 1, %s4295_s0   ;;  %p5483_p8 = scmp.ne.s32.totalorder %s5473_s25, 0 }
  0x78   : > { %s3691_s15 = smul.u32 192, %s672_s17  ;;  %s673_s19 = scalar_lea.sflag [#allocation4], %s672_s17 }
  0x7a   : > { %s4622_s3 = scalar_lea.vmem [#allocation3], %s3691_s15 }
  0x7b   : > { %4266 = dma.done.wait (%p5483_p8), %s673_s19, 3072  }
  0x7c   : > { %4268 = vsyncadd (%p5483_p8), %s673_s19, 4294964224  ;;  %s3230_s18 = sshll.u32 %s672_s17, 8  ;;  %s682_s13 = scalar_lea.sflag [#allocation7], %s672_s17 }
  0x7d   : > { %s4628_s16 = scalar_lea.vmem [#allocation6], %s3230_s18 }
  0x7e   : > { %5484 = sst [smem:[#allocation27_spill]] %s4628_s16 }
  0x7f   : > { %4270 = dma.done.wait (%p5483_p8), %s682_s13, 4096  }
  0x80   : > { %4272 = vsyncadd (%p5483_p8), %s682_s13, 4294963200  ;;  %s5440_s30 = sand.u32 1, %s4283_s28   ;;  %s3232_s27 = sshll.u32 %s4307_s20, 2 }
  0x81   : > { %s3231_s29 = sshll.u32 %s5440_s30, 5  ;;  %p785_p4 = scmp.lt.s32.totalorder %s3232_s27, 7 }
  0x82   : > { %p790_p5 = scmp.lt.s32.totalorder %s4303_s1, 1  ;;  %s5485_s23 = sld [smem:[#allocation28_spill]] }
  0x83   : > { %s5529_s27 = smov (!%p785_p4, %s3232_s27), 7  ;;  %s5486_s7 = sld [smem:[#allocation33_spill]] }
  0x84   : > { %s4640_s24 = scalar_select %p790_p5, %s4303_s1, 1 }
  0x85   : > { %s3233_s25 = sshll.u32 %s5529_s27, 3  ;;  %s4693_s15 = scalar_lea.vmem [#allocation8], %s3231_s29 }
  0x86   : > { %s3692_s14 = smul.u32 3, %s4640_s24  ;;  %s3404_s21 = sshll.u32 %s4640_s24, 6 }
  0x87   : > { %s4667_s22 = scalar_lea.vmem %s5414_s8, %s3404_s21  ;;  %s813_s30 = scalar_lea.vmem %s5417_s11, %s4640_s24 }
  0x88   : > { %s788_s6 = scalar_lea.vmem %s5485_s23, %s3233_s25  ;;  %s3405_s0 = sshll.u32 %s4640_s24, 8 }
  0x89   : > { %s4662_s16 = scalar_lea.vmem %s5486_s7, %s3692_s14  ;;  %s3238_s2 = sshll.u32 %s4640_s24, 2 }
  0x8a   : > { %s4682_s14 = scalar_lea.vmem %s5418_s12, %s3405_s0  ;;  %s5487_s25 = sld [smem:[#allocation34_spill]] }
  0x8b   : > { %s5488_s23 = sld [smem:[#allocation36_spill]]  ;;  %p3239_p7 = scmp.ne.s32.totalorder %s4303_s1, 0 }
  0x8c   : > { %v832_v0 = vld [vmem:[%s788_s6] sm:$0xff] (!%p3239_p7)  ;;  %v833_v1 = vld [vmem:[%s788_s6 + $0x8] sm:$0xff] (!%p3239_p7)  ;;  %v834_v2 = vld [vmem:[%s788_s6 + $0x10] sm:$0xff] (!%p3239_p7) }
  0x8d   : > { %831 = sbr.rel (%p3239_p7) target bundleno = 148 (0x94), region = 104  ;;  %836 = vst [vmem:[#allocation2] sm:$0xff] (!%p3239_p7), %v832_v0  ;;  %837 = vst [vmem:[#allocation2 + $0x8] sm:$0xff] (!%p3239_p7), %v833_v1  ;;  %v835_v3 = vld [vmem:[%s788_s6 + $0x18] sm:$0xff] (!%p3239_p7) }
  0x8e   : > { %838 = vst [vmem:[#allocation2 + $0x10] sm:$0xff] (!%p3239_p7), %v834_v2  ;;  %839 = vst [vmem:[#allocation2 + $0x18] sm:$0xff] (!%p3239_p7), %v835_v3 }
  0x90   : > { %s4687_s21 = scalar_lea.vmem %s5487_s25, %s3238_s2 }
  0x91   : > { %s825_s17 = scalar_lea.vmem %s5488_s23, %s4640_s24 }
  0x94 PF: > { %v840_v4 = vld [vmem:[#allocation2] sm:$0xff]  ;;  %v841_v6 = vld [vmem:[#allocation2 + $0x8] sm:$0xff]  ;;  %v3933_v28 = vld [vmem:[%s4622_s3 + $0x10] sm:$0xff]   ;;  %s5489_s29 = scalar_lea.vmem %s5410_s4, %s4640_s24  ;;  %s5490_s18 = scalar_lea.vmem %s5411_s5, %s4640_s24  ;;  %vm1501_vm0 = vcmask 261120   ;;  %vm1518_vm1 = vcmask 523264   ;;  %vm1535_vm2 = vcmask 785408  }
  0x95   : > { %v842_v5 = vld [vmem:[#allocation2 + $0x10] sm:$0xff]  ;;  %846 = vadd.xlane.f32.xlu0 %v840_v4  ;;  %v843_v7 = vld [vmem:[#allocation2 + $0x18] sm:$0xff]  ;;  %v3929_v8 = vld [vmem:[%s4622_s3] sm:$0xff]   ;;  %s5491_s0 = sld [smem:[#allocation31_spill]]  ;;  %s4326_s2 = smov 64  }
  0x96   : > { %850 = vadd.xlane.f32.xlu1 %v842_v5  ;;  %v3930_v9 = vld [vmem:[%s4622_s3 + $0x40] sm:$0xff]   ;;  %3533 = vmatprep.subr.bf16.mxu0 %v3929_v8  ;;  %v3931_v26 = vld [vmem:[%s4622_s3 + $0x8] sm:$0xff]   ;;  %v3934_v29 = vld [vmem:[%s4622_s3 + $0x50] sm:$0xff]   ;;  %s4327_s20 = smov 96   ;;  %s5493_s26 = sld [smem:[#allocation30_spill]] }
  0x97   : > { %3553 = vmatprep.subr.bf16.mxu1 %v3930_v9  ;;  %3534 = vmatpush3.bf16.msra.mxu0 %v3929_v8  ;;  %v3932_v27 = vld [vmem:[%s4622_s3 + $0x48] sm:$0xff]   ;;  %v3935_v30 = vld [vmem:[%s4622_s3 + $0x18] sm:$0xff]   ;;  %v3937_v32 = vld [vmem:[%s4622_s3 + $0x20] sm:$0xff]   ;;  %s5494_s28 = sld [smem:[#allocation29_spill]]  ;;  %s5497_s27 = scalar_lea.vmem %s5416_s10, %s4640_s24 }
  0x98   : > { %3554 = vmatpush3.bf16.msra.mxu1 %v3930_v9  ;;  %3535 = vmatprep.subr.bf16.mxu0 %v3931_v26  ;;  %v3936_v31 = vld [vmem:[%s4622_s3 + $0x58] sm:$0xff]   ;;  %v3938_v33 = vld [vmem:[%s4622_s3 + $0x60] sm:$0xff]   ;;  %v3939_v34 = vld [vmem:[%s4622_s3 + $0x28] sm:$0xff]   ;;  %p3395_p1 = scmp.ne.s32.totalorder %s4303_s1, 1 }
  0x99   : > { %848 = vadd.xlane.f32.xlu0 %v841_v6  ;;  %3555 = vmatprep.subr.bf16.mxu1 %v3932_v27  ;;  %v3940_v35 = vld [vmem:[%s4622_s3 + $0x68] sm:$0xff]   ;;  %v3941_v36 = vld [vmem:[%s4622_s3 + $0x30] sm:$0xff]   ;;  %v3943_v38 = vld [vmem:[%s4622_s3 + $0x38] sm:$0xff]  }
  0x9a   : > { %852 = vadd.xlane.f32.xlu1 %v843_v7  ;;  %v3942_v37 = vld [vmem:[%s4622_s3 + $0x70] sm:$0xff]   ;;  %v3944_v39 = vld [vmem:[%s4622_s3 + $0x78] sm:$0xff]   ;;  %v3945_v40 = vld [vmem:[%s4622_s3 + $0x80] sm:$0xff]  }
  0x9b   : > { %3536 = vmatpush3.bf16.msra.mxu0 %v3931_v26  ;;  %v3240_v55 = vld [vmem:[%s5489_s29] ss:$0 sm:$0xff]  ;;  %v3946_v9 = vld [vmem:[%s4622_s3 + $0x88] sm:$0xff]   ;;  %s5492_s25 = smov %s5491_s0 }
  0x9c   : > { %3556 = vmatpush3.bf16.msra.mxu1 %v3932_v27  ;;  %3537 = vmatprep.subr.bf16.mxu0 %v3933_v28  ;;  %v3241_v60 = vld [vmem:[%s5490_s18] ss:$0 sm:$0xff] }
  0x9d   : > { %3557 = vmatprep.subr.bf16.mxu1 %v3934_v29  ;;  %s5495_s6 = smov %s5494_s28 }
  0x9f   : > { %3538 = vmatpush3.bf16.msra.mxu0 %v3933_v28 }
  0xa0   : > { %3558 = vmatpush3.bf16.msra.mxu1 %v3934_v29  ;;  %3539 = vmatprep.subr.bf16.mxu0 %v3935_v30 }
  0xa1   : > { %3559 = vmatprep.subr.bf16.mxu1 %v3936_v31 }
  0xa3   : > { %3540 = vmatpush3.bf16.msra.mxu0 %v3935_v30 }
  0xa4   : > { %3560 = vmatpush3.bf16.msra.mxu1 %v3936_v31  ;;  %3541 = vmatprep.subr.bf16.mxu0 %v3937_v32 }
  0xa5   : > { %3561 = vmatprep.subr.bf16.mxu1 %v3938_v33 }
  0xa7   : > { %3542 = vmatpush3.bf16.msra.mxu0 %v3937_v32 }
  0xa8   : > { %3562 = vmatpush3.bf16.msra.mxu1 %v3938_v33  ;;  %3543 = vmatprep.subr.bf16.mxu0 %v3939_v34 }
  0xa9   : > { %3563 = vmatprep.subr.bf16.mxu1 %v3940_v35 }
  0xab   : > { %3544 = vmatpush3.bf16.msra.mxu0 %v3939_v34 }
  0xac   : > { %3564 = vmatpush3.bf16.msra.mxu1 %v3940_v35  ;;  %3545 = vmatprep.subr.bf16.mxu0 %v3941_v36 }
  0xad   : > { %3565 = vmatprep.subr.bf16.mxu1 %v3942_v37 }
  0xaf   : > { %3546 = vmatpush3.bf16.msra.mxu0 %v3941_v36 }
  0xb0   : > { %3566 = vmatpush3.bf16.msra.mxu1 %v3942_v37  ;;  %3547 = vmatprep.subr.bf16.mxu0 %v3943_v38  ;;  %v3294_v37 = vld [vmem:[%s4662_s16 + $0x2] ss:$0 sm:$0xff] }
  0xb1   : > { %3567 = vmatprep.subr.bf16.mxu1 %v3944_v39 }
  0xb3   : > { %3548 = vmatpush3.bf16.msra.mxu0 %v3943_v38 }
  0xb4   : > { %3568 = vmatpush3.bf16.msra.mxu1 %v3944_v39  ;;  %3573 = vmatprep.subr.bf16.mxu0 %v3945_v40 }
 0x122   : > { %v847_v10 = vpop.xlane.xlu0 %846 }
 0x123   : > { %v851_v11 = vpop.xlane.xlu1 %850  ;;  %v855_v12 = vmul.f32 0.0078125, %v847_v10  ;;  %v3947_v10 = vld [vmem:[%s4622_s3 + $0x90] sm:$0xff]  }
 0x124   : > { %v857_v13 = vmul.f32 0.0078125, %v851_v11  ;;  %v3948_v11 = vld [vmem:[%s4622_s3 + $0x98] sm:$0xff]  }
 0x125   : > { %v4698_v14 = vsub.f32 %v840_v4, %v855_v12  ;;  %v3949_v12 = vld [vmem:[%s4622_s3 + $0xa0] sm:$0xff]  }
 0x126   : > { %v4700_v15 = vsub.f32 %v842_v5, %v857_v13  ;;  %v849_v16 = vpop.xlane.xlu0 %848  ;;  %v3950_v13 = vld [vmem:[%s4622_s3 + $0xa8] sm:$0xff]  }
 0x127   : > { %v853_v17 = vpop.xlane.xlu1 %852  ;;  %v856_v18 = vmul.f32 0.0078125, %v849_v16  ;;  %v863_v19 = vmul.f32 %v4698_v14, %v4698_v14  ;;  %v3242_v16 = vld [vmem:[%s4662_s16] ss:$0 sm:$0xff] }
 0x128   : > { %v858_v20 = vmul.f32 0.0078125, %v853_v17  ;;  %v865_v23 = vmul.f32 %v4700_v15, %v4700_v15  ;;  %v3268_v17 = vld [vmem:[%s4662_s16 + $0x1] ss:$0 sm:$0xff] }
 0x129   : > { %v4704_v21 = vsub.f32 %v841_v6, %v856_v18  ;;  %867 = vadd.xlane.f32.xlu0 %v863_v19 }
 0x12a   : > { %v4706_v22 = vsub.f32 %v843_v7, %v858_v20 }
 0x12b   : > { %v864_v24 = vmul.f32 %v4704_v21, %v4704_v21 }
 0x12c   : > { %v866_v25 = vmul.f32 %v4706_v22, %v4706_v22 }
 0x12d   : > { %871 = vadd.xlane.f32.xlu0 %v865_v23  ;;  %869 = vadd.xlane.f32.xlu1 %v864_v24 }
 0x131   : > { %873 = vadd.xlane.f32.xlu1 %v866_v25 }
 0x1b6   : > { %v868_v41 = vpop.xlane.xlu0 %867 }
 0x1b7   : > { %v875_v42 = vmul.f32 0.0078125, %v868_v41 }
 0x1b9   : > { %v879_v43 = vadd.f32 1e-05, %v875_v42 }
 0x1ba   : > { %v870_v44 = vpop.xlane.xlu1 %869  ;;  %v872_v45 = vpop.xlane.xlu0 %871 }
 0x1bb   : > { %4057 = vrsqrt.f32 %v879_v43  ;;  %v876_v46 = vmul.f32 0.0078125, %v870_v44  ;;  %v877_v47 = vmul.f32 0.0078125, %v872_v45  ;;  %v4762_v45 = vld [vmem:[%s5491_s0] sm:$0xff]   ;;  %s4325_s0 = smov 32  }
 0x1bd   : > { %v880_v48 = vadd.f32 1e-05, %v876_v46  ;;  %v881_v49 = vadd.f32 1e-05, %v877_v47 }
 0x1be   : > { %v874_v50 = vpop.xlane.xlu1 %873 }
 0x1bf   : > { %4059 = vrsqrt.f32 %v880_v48  ;;  %v878_v51 = vmul.f32 0.0078125, %v874_v50  ;;  %v4767_v48 = vld [vmem:[%s5492_s25 + $0x8] sm:$0xff]  }
 0x1c0   : > { %4061 = vrsqrt.f32 %v881_v49 }
 0x1c1   : > { %v882_v52 = vadd.f32 1e-05, %v878_v51  ;;  %v4774_v51 = vld [vmem:[%s5492_s25 + $0x10] sm:$0xff]  }
 0x1c3   : > { %4063 = vrsqrt.f32 %v882_v52 }
 0x1c5   : > { %v4058_v53 = vpop.eup %4057 }
 0x1c6   : > { %v887_v54 = vmul.f32 %v4058_v53, %v4698_v14  ;;  %v3951_v14 = vld [vmem:[%s4622_s3 + $0xb0] sm:$0xff]   ;;  %v4780_v53 = vld [vmem:[%s5492_s25 + $0x18] sm:$0xff]  }
 0x1c8   : > { %v897_v59 = vmul.f32 %v3240_v55, %v887_v54 }
 0x1c9   : > { %v4060_v56 = vpop.eup %4059 }
 0x1ca   : > { %v4062_v57 = vpop.eup %4061  ;;  %v888_v58 = vmul.f32 %v4060_v56, %v4704_v21  ;;  %v907_v0 = vadd.f32 %v3241_v60, %v897_v59  ;;  %v4798_v59 = vld [vmem:[%s5492_s25 + $0x30] sm:$0xff]  }
 0x1cb   : > { %v889_v61 = vmul.f32 %v4062_v57, %v4700_v15  ;;  %v3952_v15 = vld [vmem:[%s4622_s3 + $0xb8] sm:$0xff]   ;;  %v4792_v57 = vld [vmem:[%s5492_s25 + $0x28] sm:$0xff]   ;;  %s5501_s3 = sld [smem:[#allocation38_spill]] (!%p3395_p1) }
 0x1cc   : > { %v898_v62 = vmul.f32 %v3240_v55, %v888_v58 }
 0x1cd   : > { %v4064_v63 = vpop.eup %4063  ;;  %v899_v3 = vmul.f32 %v3240_v55, %v889_v61  ;;  %v4804_v61 = vld [vmem:[%s5492_s25 + $0x38] sm:$0xff]  }
 0x1ce   : > { %v908_v1 = vadd.f32 %v3241_v60, %v898_v62  ;;  %v890_v2 = vmul.f32 %v4064_v63, %v4706_v22 }
 0x1cf   : > { %v909_v6 = vadd.f32 %v3241_v60, %v899_v3 }
 0x1d0   : > { %v911_v4 = vpack.c.bf16 %v908_v1, %v907_v0  ;;  %v900_v5 = vmul.f32 %v3240_v55, %v890_v2  ;;  %v4786_v55 = vld [vmem:[%s5492_s25 + $0x20] sm:$0xff]  }
 0x1d2   : > { %3549 = vmatprep.mubr.bf16.mxu0 %v911_v4  ;;  %3569 = vmatprep.mubr.bf16.mxu1 %v911_v4  ;;  %v910_v7 = vadd.f32 %v3241_v60, %v900_v5 }
 0x1d4   : > { %v912_v8 = vpack.c.bf16 %v910_v7, %v909_v6 }
 0x1d6   : > { %3550 = vmatmul.mubr.bf16.vlgmr.msra.gmra.mrb[0].mxu0 %v912_v8  ;;  %3570 = vmatmul.mubr.bf16.vlgmr.msra.gmra.mrb[0].mxu1 %v912_v8 }
 0x1d7   : > { %3574 = vmatpush3.bf16.msra.mxu0 %v3945_v40  ;;  %3589 = vmatprep.mubr.bf16.mxu0 %v911_v4 }
 0x1d8   : > { %3575 = vmatprep.subr.bf16.mxu0 %v3946_v9 }
 0x1db   : > { %3576 = vmatpush3.bf16.msra.mxu0 %v3946_v9 }
 0x1dc   : > { %3577 = vmatprep.subr.bf16.mxu0 %v3947_v10 }
 0x1df   : > { %3578 = vmatpush3.bf16.msra.mxu0 %v3947_v10 }
 0x1e0   : > { %3579 = vmatprep.subr.bf16.mxu0 %v3948_v11 }
 0x1e3   : > { %3580 = vmatpush3.bf16.msra.mxu0 %v3948_v11 }
 0x1e4   : > { %3581 = vmatprep.subr.bf16.mxu0 %v3949_v12 }
 0x1e7   : > { %3582 = vmatpush3.bf16.msra.mxu0 %v3949_v12 }
 0x1e8   : > { %3583 = vmatprep.subr.bf16.mxu0 %v3950_v13 }
 0x1eb   : > { %3584 = vmatpush3.bf16.msra.mxu0 %v3950_v13 }
 0x1ec   : > { %3585 = vmatprep.subr.bf16.mxu0 %v3951_v14 }
 0x1ef   : > { %3586 = vmatpush3.bf16.msra.mxu0 %v3951_v14 }
 0x1f0   : > { %3587 = vmatprep.subr.bf16.mxu0 %v3952_v15 }
 0x1f3   : > { %3588 = vmatpush3.bf16.msra.mxu0 %v3952_v15 }
 0x1f6   : > { %3590 = vmatmul.mubr.bf16.vlgmr.msra.gmra.mrb[4].mxu0 %v912_v8 }
 0x2a9   : > { %v3551_v18 = vpop.f32.mrb[0].mxu0  ;;  %v3571_v19 = vpop.f32.mrb[0].mxu1 }
 0x2aa   : > { %v4752_v20 = vadd.f32 %v3551_v18, %v3242_v16  ;;  %v1018_v21 = vpop.f32.mrb[1].mxu0  ;;  %v1140_v22 = vpop.f32.mrb[1].mxu1  ;;  %v1149_v34 = vadd.f32 %v3571_v19, %v3268_v17 }
 0x2ab   : > { %v1141_v23 = vadd.f32 %v3268_v17, %v1140_v22  ;;  %v3552_v24 = vpop.f32.mrb[2].mxu0  ;;  %v3572_v25 = vpop.f32.mrb[2].mxu1  ;;  %v1019_v29 = vadd.f32 %v3242_v16, %v1018_v21 }
 0x2ac   : > { %v4754_v26 = vadd.f32 %v3552_v24, %v3242_v16  ;;  %v1021_v27 = vpop.f32.mrb[3].mxu0  ;;  %v1143_v28 = vpop.f32.mrb[3].mxu1  ;;  %v1152_v35 = vadd.f32 %v3572_v25, %v3268_v17 }
 0x2ad   : > { %v1022_v30 = vadd.f32 %v3242_v16, %v1021_v27  ;;  %1309 = vxpose.xlu0.b32.start [1/4] (short) %v1141_v23, 128  ;;  %v1144_v33 = vadd.f32 %v3268_v17, %v1143_v28 }
 0x2ae   : > { %v1675_v31 = vpack.c.bf16 %v4754_v26, %v4752_v20 }
 0x2af   : > { %v1674_v32 = vpack.c.bf16 %v1022_v30, %v1019_v29 }
 0x2b1   : > { %1310 = vxpose.xlu0.b32.cont [2/4] (short) %v1144_v33, 128  ;;  %3609 = vmatprep.mubr.bf16.mxu1 %v1674_v32 }
 0x2b5   : > { %1311 = vxpose.xlu0.b32.cont [3/4] (short) %v1149_v34, 128 }
 0x2b9   : > { %1312 = vxpose.xlu0.b32.end [4/4] (short) %v1152_v35, 128 }
 0x2c9   : > { %v3591_v36 = vpop.f32.mrb[4].mxu0 }
 0x2ca   : > { %v1262_v38 = vpop.f32.mrb[5].mxu0  ;;  %v1271_v40 = vadd.f32 %v3591_v36, %v3294_v37 }
 0x2cb   : > { %v3592_v39 = vpop.f32.mrb[6].mxu0  ;;  %v1263_v43 = vadd.f32 %v3294_v37, %v1262_v38 }
 0x2cc   : > { %v1274_v41 = vadd.f32 %v3592_v39, %v3294_v37  ;;  %v1265_v42 = vpop.f32.mrb[7].mxu0  ;;  %v3961_v39 = vld [vmem:[%s5493_s26] sm:$0xff]  }
 0x2cd   : > { %v1266_v44 = vadd.f32 %v3294_v37, %v1265_v42 }
 0x2ce   : > { %v1617_v46 = vpack.c.bf16 %v1274_v41, %v1271_v40 }
 0x2cf   : > { %v1616_v47 = vpack.c.bf16 %v1266_v44, %v1263_v43 }
 0x2d0   : > { %v1667_v50 = vmul.bf16 %v4767_v48, %v1617_v46  ;;  %v1669_v54 = vmul.bf16 %v4780_v53, %v1617_v46  ;;  %v1671_v58 = vmul.bf16 %v4792_v57, %v1617_v46  ;;  %v1673_v62 = vmul.bf16 %v4804_v61, %v1617_v46 }
 0x2d1   : > { %v1666_v49 = vmul.bf16 %v4762_v45, %v1616_v47  ;;  %v1668_v52 = vmul.bf16 %v4774_v51, %v1616_v47  ;;  %v1670_v56 = vmul.bf16 %v4786_v55, %v1616_v47  ;;  %v1672_v60 = vmul.bf16 %v4798_v59, %v1616_v47 }
 0x2d3   : > { %3613 = vmatprep.subr.bf16.mxu0 %v1666_v49 }
 0x2d4   : > { %3614 = vmatpush3.bf16.msra.mxu0 %v1666_v49 }
 0x2d5   : > { %3615 = vmatprep.subr.bf16.mxu0 %v1667_v50 }
 0x2d8   : > { %3616 = vmatpush3.bf16.msra.mxu0 %v1667_v50 }
 0x2d9   : > { %3617 = vmatprep.subr.bf16.mxu0 %v1668_v52 }
 0x2dc   : > { %3618 = vmatpush3.bf16.msra.mxu0 %v1668_v52 }
 0x2dd   : > { %3619 = vmatprep.subr.bf16.mxu0 %v1669_v54 }
 0x2e0   : > { %3620 = vmatpush3.bf16.msra.mxu0 %v1669_v54 }
 0x2e1   : > { %3621 = vmatprep.subr.bf16.mxu0 %v1670_v56 }
 0x2e4   : > { %3622 = vmatpush3.bf16.msra.mxu0 %v1670_v56 }
 0x2e5   : > { %3623 = vmatprep.subr.bf16.mxu0 %v1671_v58 }
 0x2e8   : > { %3624 = vmatpush3.bf16.msra.mxu0 %v1671_v58 }
 0x2e9   : > { %3625 = vmatprep.subr.bf16.mxu0 %v1672_v60 }
 0x2ec   : > { %3626 = vmatpush3.bf16.msra.mxu0 %v1672_v60 }
 0x2ed   : > { %3627 = vmatprep.subr.bf16.mxu0 %v1673_v62 }
 0x2f0   : > { %3628 = vmatpush3.bf16.msra.mxu0 %v1673_v62 }
 0x32d   : > { %v4807_v63 = vpop.trf.xlu0 }
 0x331   : > { %v1326_v0 = vpop.trf.xlu0 }
 0x332   : > { %v3809_v1 = vpack.i.bf16 %v1326_v0, %v4807_v63 }
 0x334   : > { %3810 = vrot.lane.b32.xlu1 %v3809_v1, %s4325_s0 }
 0x335   : > { %v4811_v2 = vpop.trf.xlu0 }
 0x338   : > { %3815 = vrot.lane.b32.xlu1 %v3809_v1, %s4326_s2 }
 0x339   : > { %v4814_v3 = vpop.trf.xlu0 }
 0x33a   : > { %v3824_v5 = vpack.i.bf16 %v4814_v3, %v4811_v2 }
 0x33c   : > { %3820 = vrot.lane.b32.xlu1 %v3809_v1, %s4327_s20  ;;  %v3962_v1 = vld [vmem:[%s5493_s26 + $0x8] sm:$0xff]  }
 0x33d   : > { %v4817_v4 = vpop.trf.xlu0 }
 0x340   : > { %3825 = vrot.lane.b32.xlu1 %v3824_v5, %s4325_s0 }
 0x341   : > { %v4822_v6 = vpop.trf.xlu0 }
 0x342   : > { %v3839_v9 = vpack.i.bf16 %v4822_v6, %v4817_v4 }
 0x344   : > { %3830 = vrot.lane.b32.xlu1 %v3824_v5, %s4326_s2 }
 0x345   : > { %v4825_v7 = vpop.trf.xlu0 }
 0x348   : > { %3835 = vrot.lane.b32.xlu1 %v3824_v5, %s4327_s20 }
 0x349   : > { %v4828_v8 = vpop.trf.xlu0 }
 0x34a   : > { %v3864_v10 = vpack.i.bf16 %v4828_v8, %v4825_v7 }
 0x34c   : > { %3840 = vrot.lane.b32.xlu1 %v3839_v9, %s4325_s0  ;;  %3865 = vrot.lane.b32.xlu0 %v3864_v10, %s4327_s20 }
 0x34d   : > { %v4838_v11 = vpop.trf.xlu0 }
 0x350   : > { %3845 = vrot.lane.b32.xlu1 %v3839_v9, %s4326_s2 }
 0x351   : > { %v4841_v12 = vpop.trf.xlu0 }
 0x352   : > { %v3869_v13 = vpack.i.bf16 %v4841_v12, %v4838_v11 }
 0x354   : > { %3850 = vrot.lane.b32.xlu1 %v3839_v9, %s4327_s20 }
 0x355   : > { %v4847_v14 = vpop.trf.xlu0 }
 0x358   : > { %3855 = vrot.lane.b32.xlu1 %v3864_v10, %s4325_s0 }
 0x359   : > { %v4850_v15 = vpop.trf.xlu0 }
 0x35a   : > { %v3884_v16 = vpack.i.bf16 %v4850_v15, %v4847_v14 }
 0x35c   : > { %3860 = vrot.lane.b32.xlu1 %v3864_v10, %s4326_s2 }
 0x35d   : > { %v4856_v17 = vpop.trf.xlu0 }
 0x360   : > { %3870 = vrot.lane.b32.xlu1 %v3869_v13, %s4325_s0 }
 0x361   : > { %v4859_v18 = vpop.trf.xlu0 }
 0x362   : > { %v3899_v19 = vpack.i.bf16 %v4859_v18, %v4856_v17 }
 0x364   : > { %3875 = vrot.lane.b32.xlu1 %v3869_v13, %s4326_s2 }
 0x365   : > { %v4865_v21 = vpop.trf.xlu0 }
 0x368   : > { %3880 = vrot.lane.b32.xlu1 %v3869_v13, %s4327_s20 }
 0x369   : > { %v4868_v22 = vpop.trf.xlu0 }
 0x36a   : > { %v3914_v23 = vpack.i.bf16 %v4868_v22, %v4865_v21 }
 0x36c   : > { %3885 = vrot.lane.b32.xlu1 %v3884_v16, %s4325_s0 }
 0x370   : > { %3890 = vrot.lane.b32.xlu1 %v3884_v16, %s4326_s2 }
 0x374   : > { %3895 = vrot.lane.b32.xlu1 %v3884_v16, %s4327_s20 }
 0x378   : > { %3900 = vrot.lane.b32.xlu1 %v3899_v19, %s4325_s0 }
 0x37c   : > { %3905 = vrot.lane.b32.xlu1 %v3899_v19, %s4326_s2 }
 0x380   : > { %3910 = vrot.lane.b32.xlu1 %v3899_v19, %s4327_s20 }
 0x384   : > { %3915 = vrot.lane.b32.xlu1 %v3914_v23, %s4325_s0 }
 0x388   : > { %3920 = vrot.lane.b32.xlu1 %v3914_v23, %s4326_s2 }
 0x38c   : > { %3925 = vrot.lane.b32.xlu1 %v3914_v23, %s4327_s20  ;;  %s5496_s20 = scalar_lea.vmem %s5415_s9, %s4640_s24 }
 0x3a6   : > { %v3811_v24 = vpop.permute.xlu1 %3810 }
 0x3a7   : > { %v3813_v27 = vunpack.i.h.bf16 %v3811_v24  ;;  %v3812_v28 = vunpack.i.l.bf16 %v3811_v24 }
 0x3a9   : > { %v1503_v33 = vsel %vm1501_vm0, %v1326_v0, %v3813_v27  ;;  %v1502_v34 = vsel %vm1501_vm0, %v4807_v63, %v3812_v28 }
 0x3aa   : > { %v3816_v25 = vpop.permute.xlu1 %3815 }
 0x3ab   : > { %v3818_v29 = vunpack.i.h.bf16 %v3816_v25  ;;  %v3817_v30 = vunpack.i.l.bf16 %v3816_v25 }
 0x3ad   : > { %v1519_v37 = vsel %vm1518_vm1, %v1502_v34, %v3817_v30  ;;  %v1520_v38 = vsel %vm1518_vm1, %v1503_v33, %v3818_v29  ;;  %v3963_v34 = vld [vmem:[%s5493_s26 + $0x10] sm:$0xff]  }
 0x3ae   : > { %v3821_v32 = vpop.permute.xlu1 %3820 }
 0x3af   : > { %v3823_v35 = vunpack.i.h.bf16 %v3821_v32  ;;  %v3822_v36 = vunpack.i.l.bf16 %v3821_v32 }
 0x3b1   : > { %v1536_v40 = vsel %vm1535_vm2, %v1519_v37, %v3822_v36  ;;  %v1537_v41 = vsel %vm1535_vm2, %v1520_v38, %v3823_v35 }
 0x3b2   : > { %v3826_v42 = vpop.permute.xlu1 %3825  ;;  %v1552_v43 = vpack.c.bf16 %v1537_v41, %v1536_v40 }
 0x3b3   : > { %v3828_v47 = vunpack.i.h.bf16 %v3826_v42  ;;  %v3827_v49 = vunpack.i.l.bf16 %v3826_v42 }
 0x3b4   : > { %v1608_v44 = vmul.bf16 %v3961_v39, %v1552_v43 }
 0x3b5   : > { %v1505_v56 = vsel %vm1501_vm0, %v4814_v3, %v3828_v47  ;;  %v1504_v58 = vsel %vm1501_vm0, %v4811_v2, %v3827_v49 }
 0x3b6   : > { %3593 = vmatprep.subr.bf16.mxu1 %v1608_v44  ;;  %v3831_v46 = vpop.permute.xlu1 %3830 }
 0x3b7   : > { %3594 = vmatpush3.bf16.msra.mxu1 %v1608_v44  ;;  %v3833_v50 = vunpack.i.h.bf16 %v3831_v46  ;;  %v3832_v52 = vunpack.i.l.bf16 %v3831_v46 }
 0x3b9   : > { %v1521_v63 = vsel %vm1518_vm1, %v1504_v58, %v3832_v52  ;;  %v1522_v0 = vsel %vm1518_vm1, %v1505_v56, %v3833_v50 }
 0x3ba   : > { %v3836_v54 = vpop.permute.xlu1 %3835 }
 0x3bb   : > { %v3838_v60 = vunpack.i.h.bf16 %v3836_v54  ;;  %v3837_v62 = vunpack.i.l.bf16 %v3836_v54  ;;  %v3964_v54 = vld [vmem:[%s5493_s26 + $0x18] sm:$0xff]  }
 0x3bd   : > { %v1538_v5 = vsel %vm1535_vm2, %v1521_v63, %v3837_v62  ;;  %v1539_v9 = vsel %vm1535_vm2, %v1522_v0, %v3838_v60 }
 0x3be   : > { %v3841_v10 = vpop.permute.xlu1 %3840  ;;  %v1553_v13 = vpack.c.bf16 %v1539_v9, %v1538_v5 }
 0x3bf   : > { %v3843_v2 = vunpack.i.h.bf16 %v3841_v10  ;;  %v3842_v19 = vunpack.i.l.bf16 %v3841_v10 }
 0x3c0   : > { %v1609_v3 = vmul.bf16 %v3962_v1, %v1553_v13 }
 0x3c1   : > { %v1507_v27 = vsel %vm1501_vm0, %v4822_v6, %v3843_v2  ;;  %v1506_v28 = vsel %vm1501_vm0, %v4817_v4, %v3842_v19  ;;  %v3866_v4 = vpop.permute.xlu0 %3865 }
 0x3c2   : > { %3595 = vmatprep.subr.bf16.mxu1 %v1609_v3  ;;  %v3846_v16 = vpop.permute.xlu1 %3845  ;;  %v3868_v44 = vunpack.i.h.bf16 %v3866_v4  ;;  %v3867_v46 = vunpack.i.l.bf16 %v3866_v4 }
 0x3c3   : > { %3596 = vmatpush3.bf16.msra.mxu1 %v1609_v3  ;;  %v3848_v23 = vunpack.i.h.bf16 %v3846_v16  ;;  %v3847_v24 = vunpack.i.l.bf16 %v3846_v16 }
 0x3c5   : > { %v1523_v32 = vsel %vm1518_vm1, %v1506_v28, %v3847_v24  ;;  %v1524_v33 = vsel %vm1518_vm1, %v1507_v27, %v3848_v23  ;;  %v3965_v23 = vld [vmem:[%s5493_s26 + $0x20] sm:$0xff]  }
 0x3c6   : > { %v3851_v25 = vpop.permute.xlu1 %3850 }
 0x3c7   : > { %v3853_v29 = vunpack.i.h.bf16 %v3851_v25  ;;  %v3852_v30 = vunpack.i.l.bf16 %v3851_v25 }
 0x3c9   : > { %v1540_v35 = vsel %vm1535_vm2, %v1523_v32, %v3852_v30  ;;  %v1541_v36 = vsel %vm1535_vm2, %v1524_v33, %v3853_v29 }
 0x3ca   : > { %v3856_v37 = vpop.permute.xlu1 %3855  ;;  %v1554_v38 = vpack.c.bf16 %v1541_v36, %v1540_v35 }
 0x3cb   : > { %v3858_v6 = vunpack.i.h.bf16 %v3856_v37  ;;  %v3857_v39 = vunpack.i.l.bf16 %v3856_v37 }
 0x3cc   : > { %v1610_v40 = vmul.bf16 %v3963_v34, %v1554_v38 }
 0x3cd   : > { %v1509_v47 = vsel %vm1501_vm0, %v4828_v8, %v3858_v6  ;;  %v1508_v49 = vsel %vm1501_vm0, %v4825_v7, %v3857_v39 }
 0x3ce   : > { %3597 = vmatprep.subr.bf16.mxu1 %v1610_v40  ;;  %v3861_v41 = vpop.permute.xlu1 %3860 }
 0x3cf   : > { %v3863_v42 = vunpack.i.h.bf16 %v3861_v41  ;;  %v3862_v43 = vunpack.i.l.bf16 %v3861_v41  ;;  %3598 = vmatpush3.bf16.msra.mxu1 %v1610_v40  ;;  %v3966_v40 = vld [vmem:[%s5493_s26 + $0x28] sm:$0xff]  }
 0x3d1   : > { %v1525_v50 = vsel %vm1518_vm1, %v1508_v49, %v3862_v43  ;;  %v1526_v52 = vsel %vm1518_vm1, %v1509_v47, %v3863_v42 }
 0x3d2   : > { %v3871_v56 = vpop.permute.xlu1 %3870  ;;  %v1542_v58 = vsel %vm1535_vm2, %v1525_v50, %v3867_v46  ;;  %v1543_v60 = vsel %vm1535_vm2, %v1526_v52, %v3868_v44 }
 0x3d3   : > { %v1555_v62 = vpack.c.bf16 %v1543_v60, %v1542_v58  ;;  %v3873_v8 = vunpack.i.h.bf16 %v3871_v56  ;;  %v3872_v1 = vunpack.i.l.bf16 %v3871_v56 }
 0x3d5   : > { %v1611_v63 = vmul.bf16 %v3964_v54, %v1555_v62  ;;  %v1511_v10 = vsel %vm1501_vm0, %v4841_v12, %v3873_v8  ;;  %v1510_v13 = vsel %vm1501_vm0, %v4838_v11, %v3872_v1 }
 0x3d6   : > { %v3876_v0 = vpop.permute.xlu1 %3875 }
 0x3d7   : > { %3599 = vmatprep.subr.bf16.mxu1 %v1611_v63  ;;  %v3878_v7 = vunpack.i.h.bf16 %v3876_v0  ;;  %v3877_v5 = vunpack.i.l.bf16 %v3876_v0 }
 0x3d8   : > { %3600 = vmatpush3.bf16.msra.mxu1 %v1611_v63  ;;  %v3967_v63 = vld [vmem:[%s5493_s26 + $0x30] sm:$0xff]  }
 0x3d9   : > { %v1527_v2 = vsel %vm1518_vm1, %v1510_v13, %v3877_v5  ;;  %v1528_v19 = vsel %vm1518_vm1, %v1511_v10, %v3878_v7 }
 0x3da   : > { %v3881_v9 = vpop.permute.xlu1 %3880 }
 0x3db   : > { %v3883_v3 = vunpack.i.h.bf16 %v3881_v9  ;;  %v3882_v16 = vunpack.i.l.bf16 %v3881_v9 }
 0x3dd   : > { %v1544_v24 = vsel %vm1535_vm2, %v1527_v2, %v3882_v16  ;;  %v1545_v25 = vsel %vm1535_vm2, %v1528_v19, %v3883_v3 }
 0x3de   : > { %v3886_v27 = vpop.permute.xlu1 %3885  ;;  %v1556_v28 = vpack.c.bf16 %v1545_v25, %v1544_v24 }
 0x3df   : > { %v3888_v11 = vunpack.i.h.bf16 %v3886_v27  ;;  %v3887_v30 = vunpack.i.l.bf16 %v3886_v27  ;;  %v3968_v27 = vld [vmem:[%s5493_s26 + $0x38] sm:$0xff]  }
 0x3e0   : > { %v1612_v12 = vmul.bf16 %v3965_v23, %v1556_v28 }
 0x3e1   : > { %v1513_v35 = vsel %vm1501_vm0, %v4850_v15, %v3888_v11  ;;  %v1512_v36 = vsel %vm1501_vm0, %v4847_v14, %v3887_v30 }
 0x3e2   : > { %v3891_v29 = vpop.permute.xlu1 %3890  ;;  %3601 = vmatprep.subr.bf16.mxu1 %v1612_v12 }
 0x3e3   : > { %3602 = vmatpush3.bf16.msra.mxu1 %v1612_v12  ;;  %v3893_v32 = vunpack.i.h.bf16 %v3891_v29  ;;  %v3892_v33 = vunpack.i.l.bf16 %v3891_v29 }
 0x3e5   : > { %v1529_v6 = vsel %vm1518_vm1, %v1512_v36, %v3892_v33  ;;  %v1530_v39 = vsel %vm1518_vm1, %v1513_v35, %v3893_v32  ;;  %v1731_v32 = vld [vmem:[%s5495_s6 + $0x10] sm:$0xff] }
 0x3e6   : > { %v3896_v34 = vpop.permute.xlu1 %3895 }
 0x3e7   : > { %v3898_v37 = vunpack.i.h.bf16 %v3896_v34  ;;  %v3897_v38 = vunpack.i.l.bf16 %v3896_v34  ;;  %v3969_v34 = vld [vmem:[%s4667_s22] sm:$0xff]  }
 0x3e8   : > { %3653 = vmatprep.subr.bf16.mxu0 %v3969_v34 }
 0x3e9   : > { %v1546_v4 = vsel %vm1535_vm2, %v1529_v6, %v3897_v38  ;;  %v1547_v41 = vsel %vm1535_vm2, %v1530_v39, %v3898_v37 }
 0x3ea   : > { %v3901_v42 = vpop.permute.xlu1 %3900  ;;  %v1557_v43 = vpack.c.bf16 %v1547_v41, %v1546_v4 }
 0x3eb   : > { %v3903_v14 = vunpack.i.h.bf16 %v3901_v42  ;;  %v3902_v46 = vunpack.i.l.bf16 %v3901_v42 }
 0x3ec   : > { %v1613_v15 = vmul.bf16 %v3966_v40, %v1557_v43 }
 0x3ed   : > { %v1515_v52 = vsel %vm1501_vm0, %v4859_v18, %v3903_v14  ;;  %v1514_v54 = vsel %vm1501_vm0, %v4856_v17, %v3902_v46 }
 0x3ee   : > { %v3906_v44 = vpop.permute.xlu1 %3905  ;;  %3603 = vmatprep.subr.bf16.mxu1 %v1613_v15 }
 0x3ef   : > { %3604 = vmatpush3.bf16.msra.mxu1 %v1613_v15  ;;  %v3908_v47 = vunpack.i.h.bf16 %v3906_v44  ;;  %v3907_v49 = vunpack.i.l.bf16 %v3906_v44 }
 0x3f1   : > { %v1531_v60 = vsel %vm1518_vm1, %v1514_v54, %v3907_v49  ;;  %v1532_v62 = vsel %vm1518_vm1, %v1515_v52, %v3908_v47  ;;  %v3970_v52 = vld [vmem:[%s4667_s22 + $0x8] sm:$0xff]   ;;  %v3971_v54 = vld [vmem:[%s4667_s22 + $0x10] sm:$0xff]  }
 0x3f2   : > { %v3911_v50 = vpop.permute.xlu1 %3910 }
 0x3f3   : > { %v3913_v56 = vunpack.i.h.bf16 %v3911_v50  ;;  %v3912_v58 = vunpack.i.l.bf16 %v3911_v50 }
 0x3f5   : > { %v1548_v0 = vsel %vm1535_vm2, %v1531_v60, %v3912_v58  ;;  %v1549_v8 = vsel %vm1535_vm2, %v1532_v62, %v3913_v56  ;;  %v3972_v56 = vld [vmem:[%s4667_s22 + $0x18] sm:$0xff]   ;;  %v3973_v58 = vld [vmem:[%s4667_s22 + $0x20] sm:$0xff]   ;;  %v3974_v60 = vld [vmem:[%s4667_s22 + $0x28] sm:$0xff]  }
 0x3f6   : > { %v3916_v1 = vpop.permute.xlu1 %3915  ;;  %v1558_v7 = vpack.c.bf16 %v1549_v8, %v1548_v0  ;;  %v3975_v62 = vld [vmem:[%s4667_s22 + $0x30] sm:$0xff]  }
 0x3f7   : > { %v3918_v17 = vunpack.i.h.bf16 %v3916_v1  ;;  %v3917_v9 = vunpack.i.l.bf16 %v3916_v1 }
 0x3f8   : > { %v1614_v18 = vmul.bf16 %v3967_v63, %v1558_v7  ;;  %v3976_v63 = vld [vmem:[%s4667_s22 + $0x38] sm:$0xff]  }
 0x3f9   : > { %v1517_v16 = vsel %vm1501_vm0, %v4868_v22, %v3918_v17  ;;  %v1516_v2 = vsel %vm1501_vm0, %v4865_v21, %v3917_v9 }
 0x3fa   : > { %v3921_v5 = vpop.permute.xlu1 %3920  ;;  %3605 = vmatprep.subr.bf16.mxu1 %v1614_v18 }
 0x3fb   : > { %3606 = vmatpush3.bf16.msra.mxu1 %v1614_v18  ;;  %v3923_v10 = vunpack.i.h.bf16 %v3921_v5  ;;  %v3922_v13 = vunpack.i.l.bf16 %v3921_v5 }
 0x3fd   : > { %v1533_v24 = vsel %vm1518_vm1, %v1516_v2, %v3922_v13  ;;  %v1534_v25 = vsel %vm1518_vm1, %v1517_v16, %v3923_v10 }
 0x3fe   : > { %v3926_v3 = vpop.permute.xlu1 %3925 }
 0x3ff   : > { %v3928_v19 = vunpack.i.h.bf16 %v3926_v3  ;;  %v3927_v23 = vunpack.i.l.bf16 %v3926_v3 }
 0x401   : > { %v1550_v28 = vsel %vm1535_vm2, %v1533_v24, %v3927_v23  ;;  %v1551_v12 = vsel %vm1535_vm2, %v1534_v25, %v3928_v19 }
 0x402   : > { %v1559_v29 = vpack.c.bf16 %v1551_v12, %v1550_v28 }
 0x404   : > { %v1615_v11 = vmul.bf16 %v3968_v27, %v1559_v29 }
 0x406   : > { %3607 = vmatprep.subr.bf16.mxu1 %v1615_v11 }
 0x407   : > { %3608 = vmatpush3.bf16.msra.mxu1 %v1615_v11 }
 0x408   : > { %3633 = vmatprep.subr.bf16.mxu1 %v4762_v45 }
 0x40a   : > { %3610 = vmatmul.mubr.bf16.vlgmr.msra.gmra.mrb[4].mxu1 %v1675_v31  ;;  %v1729_v31 = vld [vmem:[%s5494_s28] sm:$0xff]  ;;  %s5498_s28 = sld [smem:[#allocation27_spill]] }
 0x40b   : > { %3634 = vmatpush3.bf16.msra.mxu1 %v4762_v45 }
 0x40c   : > { %3635 = vmatprep.subr.bf16.mxu1 %v4767_v48 }
 0x40f   : > { %3636 = vmatpush3.bf16.msra.mxu1 %v4767_v48 }
 0x410   : > { %3637 = vmatprep.subr.bf16.mxu1 %v4774_v51 }
 0x413   : > { %3638 = vmatpush3.bf16.msra.mxu1 %v4774_v51  ;;  %v1732_v51 = vld [vmem:[%s5495_s6 + $0x18] sm:$0xff] }
 0x414   : > { %3639 = vmatprep.subr.bf16.mxu1 %v4780_v53 }
 0x417   : > { %3640 = vmatpush3.bf16.msra.mxu1 %v4780_v53 }
 0x418   : > { %3641 = vmatprep.subr.bf16.mxu1 %v4786_v55 }
 0x41b   : > { %3642 = vmatpush3.bf16.msra.mxu1 %v4786_v55 }
 0x41c   : > { %3643 = vmatprep.subr.bf16.mxu1 %v4792_v57 }
 0x41f   : > { %3644 = vmatpush3.bf16.msra.mxu1 %v4792_v57 }
 0x420   : > { %3645 = vmatprep.subr.bf16.mxu1 %v4798_v59 }
 0x423   : > { %3646 = vmatpush3.bf16.msra.mxu1 %v4798_v59 }
 0x424   : > { %3647 = vmatprep.subr.bf16.mxu1 %v4804_v61 }
 0x427   : > { %3648 = vmatpush3.bf16.msra.mxu1 %v4804_v61  ;;  %v1730_v61 = vld [vmem:[%s5495_s6 + $0x8] sm:$0xff] }
 0x4dd   : > { %v3611_v20 = vpop.f32.mrb[4].mxu1 }
 0x4de   : > { %v1710_v26 = vpop.f32.mrb[5].mxu1  ;;  %v1727_v22 = vmul.f32 0.17677669, %v3611_v20 }
 0x4df   : > { %v1725_v45 = vmul.f32 0.17677669, %v1710_v26  ;;  %v3612_v48 = vpop.f32.mrb[6].mxu1  ;;  %v3327_v26 = vld [vmem:[%s5496_s20] ss:$0 sm:$0xff] }
 0x4e0   : > { %v1728_v53 = vmul.f32 0.17677669, %v3612_v48  ;;  %v1713_v55 = vpop.f32.mrb[7].mxu1  ;;  %v1735_v33 = vadd.f32 %v1731_v32, %v1727_v22  ;;  %v4124_v32 = vld [vmem:[#allocation2 + $0x18] sm:$0xff] }
 0x4e1   : > { %v1726_v57 = vmul.f32 0.17677669, %v1713_v55  ;;  %v1733_v59 = vadd.f32 %v1729_v31, %v1725_v45  ;;  %v4121_v45 = vld [vmem:[#allocation2] sm:$0xff] }
 0x4e2   : > { %v1736_v21 = vadd.f32 %v1732_v51, %v1728_v53 }
 0x4e3   : > { %1737 = vmax.xlane.f32.xlu1 %v1733_v59  ;;  %v1734_v30 = vadd.f32 %v1730_v61, %v1726_v57  ;;  %v4122_v57 = vld [vmem:[#allocation2 + $0x8] sm:$0xff] }
 0x4e4   : > { %1743 = vmax.xlane.f32.xlu0 %v1736_v21 }
 0x4e7   : > { %1739 = vmax.xlane.f32.xlu1 %v1734_v30 }
 0x4eb   : > { %1741 = vmax.xlane.f32.xlu1 %v1735_v33 }
 0x570   : > { %v1738_v35 = vpop.xlane.xlu1 %1737 }
 0x571   : > { %v1745_v36 = vsub.f32 %v1733_v59, %v1738_v35  ;;  %v1744_v37 = vpop.xlane.xlu0 %1743  ;;  %v3977_v35 = vld [vmem:[%s4682_s14] ss:$16 sps:$4 sm:$0xff]  }
 0x572   : > { %v1748_v6 = vsub.f32 %v1736_v21, %v1744_v37  ;;  %v4123_v21 = vld [vmem:[#allocation2 + $0x10] sm:$0xff]  ;;  %v3980_v37 = vld [vmem:[%s4682_s14 + $0x8] ss:$16 sps:$4 sm:$0xff]  }
 0x573   : > { %v1749_v38 = vmul.f32 1.442695, %v1745_v36  ;;  %v3979_v36 = vld [vmem:[%s4682_s14 + $0x4] ss:$16 sps:$4 sm:$0xff]  }
 0x574   : > { %v1740_v39 = vpop.xlane.xlu1 %1739  ;;  %v1755_v41 = vmul.f32 1.442695, %v1748_v6  ;;  %v3985_v6 = vld [vmem:[%s4682_s14 + $0x24] ss:$16 sps:$4 sm:$0xff]   ;;  %2281 = vmatprep.subr.bf16.mxu1 %v3979_v36 }
 0x575   : > { %v1746_v40 = vsub.f32 %v1734_v30, %v1740_v39  ;;  %4065 = vpow2.f32 %v1749_v38  ;;  %v3982_v38 = vld [vmem:[%s4682_s14 + $0xc] ss:$16 sps:$4 sm:$0xff]  }
 0x576   : > { %v3988_v39 = vld [vmem:[%s4682_s14 + $0x2c] ss:$16 sps:$4 sm:$0xff]  }
 0x577   : > { %v1751_v4 = vmul.f32 1.442695, %v1746_v40  ;;  %v3983_v40 = vld [vmem:[%s4682_s14 + $0x20] ss:$16 sps:$4 sm:$0xff]  }
 0x578   : > { %v1742_v42 = vpop.xlane.xlu1 %1741 }
 0x579   : > { %4067 = vpow2.f32 %v1751_v4  ;;  %v1747_v43 = vsub.f32 %v1735_v33, %v1742_v42  ;;  %v3986_v4 = vld [vmem:[%s4682_s14 + $0x28] ss:$16 sps:$4 sm:$0xff]  }
 0x57a   : > { %4069 = vpow2.f32 %v1755_v41 }
 0x57b   : > { %v1753_v15 = vmul.f32 1.442695, %v1747_v43 }
 0x57d   : > { %4071 = vpow2.f32 %v1753_v15 }
 0x57f   : > { %v4066_v44 = vpop.eup %4065 }
 0x583   : > { %v4068_v14 = vpop.eup %4067 }
 0x584   : > { %v1757_v46 = vpack.c.bf16 %v4068_v14, %v4066_v44  ;;  %v4070_v47 = vpop.eup %4069 }
 0x586   : > { %3629 = vmatprep.mubr.bf16.mxu0 %v1757_v46  ;;  %3649 = vmatprep.mubr.bf16.mxu1 %v1757_v46 }
 0x587   : > { %v4072_v49 = vpop.eup %4071 }
 0x588   : > { %v1758_v50 = vpack.c.bf16 %v4070_v47, %v4072_v49 }
 0x58a   : > { %3630 = vmatmul.mubr.bf16.vlgmr.msra.gmra.mrb[8].mxu0 %v1758_v50  ;;  %3650 = vmatmul.mubr.bf16.vlgmr.msra.gmra.mrb[8].mxu1 %v1758_v50 }
 0x58b   : > { %3654 = vmatpush3.bf16.msra.mxu0 %v3969_v34  ;;  %2282 = vmatpush1.bf16.msra.mxu1 %v3977_v35 }
 0x58c   : > { %3655 = vmatprep.subr.bf16.mxu0 %v3970_v52  ;;  %2283 = vmatprep.subr.bf16.mxu1 %v3985_v6 }
 0x58f   : > { %3656 = vmatpush3.bf16.msra.mxu0 %v3970_v52  ;;  %2284 = vmatpush1.bf16.msra.mxu1 %v3983_v40 }
 0x590   : > { %3657 = vmatprep.subr.bf16.mxu0 %v3971_v54 }
 0x593   : > { %3658 = vmatpush3.bf16.msra.mxu0 %v3971_v54 }
 0x594   : > { %3659 = vmatprep.subr.bf16.mxu0 %v3972_v56 }
 0x597   : > { %3660 = vmatpush3.bf16.msra.mxu0 %v3972_v56 }
 0x598   : > { %3661 = vmatprep.subr.bf16.mxu0 %v3973_v58 }
 0x59b   : > { %3662 = vmatpush3.bf16.msra.mxu0 %v3973_v58 }
 0x59c   : > { %3663 = vmatprep.subr.bf16.mxu0 %v3974_v60 }
 0x59f   : > { %3664 = vmatpush3.bf16.msra.mxu0 %v3974_v60 }
 0x5a0   : > { %3665 = vmatprep.subr.bf16.mxu0 %v3975_v62 }
 0x5a3   : > { %3666 = vmatpush3.bf16.msra.mxu0 %v3975_v62 }
 0x5a4   : > { %3667 = vmatprep.subr.bf16.mxu0 %v3976_v63 }
 0x5a7   : > { %3668 = vmatpush3.bf16.msra.mxu0 %v3976_v63  ;;  %v3991_v63 = vld [vmem:[%s4682_s14 + $0x44] ss:$16 sps:$4 sm:$0xff]  }
 0x5a8   : > { %2334 = vmatprep.subr.bf16.mxu0 %v3982_v38  ;;  %2285 = vmatprep.subr.bf16.mxu1 %v3991_v63  ;;  %v3328_v38 = vld [vmem:[%s5497_s27] ss:$0 sm:$0xff] }
 0x5a9   : > { %v4027_v63 = vld [vmem:[%s5498_s28 + $0xc0] sm:$0xff]  }
 0x65d   : > { %v3631_v0 = vpop.f32.mrb[8].mxu0  ;;  %v3651_v8 = vpop.f32.mrb[8].mxu1 }
 0x65e   : > { %v1859_v1 = vmax.f32 %v3651_v8, 1e-20  ;;  %v1793_v7 = vpop.f32.mrb[9].mxu0  ;;  %v1842_v18 = vpop.f32.mrb[9].mxu1  ;;  %v3989_v8 = vld [vmem:[%s4682_s14 + $0x40] ss:$16 sps:$4 sm:$0xff]  }
 0x65f   : > { %v1857_v5 = vmax.f32 %v1842_v18, 1e-20  ;;  %v3632_v17 = vpop.f32.mrb[10].mxu0  ;;  %v3652_v9 = vpop.f32.mrb[10].mxu1  ;;  %2286 = vmatpush1.bf16.msra.mxu1 %v3989_v8  ;;  %v4000_v18 = vld [vmem:[%s4682_s14 + $0x6c] ss:$16 sps:$4 sm:$0xff]  }
 0x660   : > { %4073 = vrcp.f32 %v1859_v1  ;;  %v1860_v10 = vmax.f32 %v3652_v9, 1e-20  ;;  %v1796_v13 = vpop.f32.mrb[11].mxu0  ;;  %v1845_v3 = vpop.f32.mrb[11].mxu1  ;;  %v3992_v1 = vld [vmem:[%s4682_s14 + $0x48] ss:$16 sps:$4 sm:$0xff]  }
 0x661   : > { %4075 = vrcp.f32 %v1857_v5  ;;  %v1858_v16 = vmax.f32 %v1845_v3, 1e-20  ;;  %v3995_v5 = vld [vmem:[%s4682_s14 + $0x60] ss:$16 sps:$4 sm:$0xff]   ;;  %v4003_v9 = vld [vmem:[%s4682_s14 + $0x84] ss:$16 sps:$4 sm:$0xff]  }
 0x662   : > { %4077 = vrcp.f32 %v1860_v10  ;;  %v4006_v10 = vld [vmem:[%s4682_s14 + $0x8c] ss:$16 sps:$4 sm:$0xff]   ;;  %v4004_v3 = vld [vmem:[%s4682_s14 + $0x88] ss:$16 sps:$4 sm:$0xff]  }
 0x663   : > { %4079 = vrcp.f32 %v1858_v16  ;;  %v4009_v16 = vld [vmem:[%s4682_s14 + $0xa4] ss:$16 sps:$4 sm:$0xff]   ;;  %v4030_v8 = vld [vmem:[%s5498_s28 + $0x8] sm:$0xff]  }
 0x66a   : > { %v4074_v2 = vpop.eup %4073 }
 0x66b   : > { %v4076_v19 = vpop.eup %4075  ;;  %v1867_v23 = vmul.f32 %v4074_v2, %v3631_v0  ;;  %v3994_v0 = vld [vmem:[%s4682_s14 + $0x4c] ss:$16 sps:$4 sm:$0xff]  }
 0x66c   : > { %v4078_v24 = vpop.eup %4077  ;;  %v1865_v25 = vmul.f32 %v4076_v19, %v1793_v7  ;;  %v3997_v7 = vld [vmem:[%s4682_s14 + $0x64] ss:$16 sps:$4 sm:$0xff]   ;;  %v4012_v2 = vld [vmem:[%s4682_s14 + $0xac] ss:$16 sps:$4 sm:$0xff]   ;;  %v4007_v19 = vld [vmem:[%s4682_s14 + $0xa0] ss:$16 sps:$4 sm:$0xff]  }
 0x66d   : > { %v4080_v27 = vpop.eup %4079  ;;  %v1868_v28 = vmul.f32 %v4078_v24, %v3632_v17  ;;  %v3998_v17 = vld [vmem:[%s4682_s14 + $0x68] ss:$16 sps:$4 sm:$0xff]   ;;  %2287 = vmatprep.subr.bf16.mxu1 %v3997_v7  ;;  %v4015_v24 = vld [vmem:[%s4682_s14 + $0xc4] ss:$16 sps:$4 sm:$0xff]  }
 0x66e   : > { %v1866_v12 = vmul.f32 %v4080_v27, %v1796_v13  ;;  %2288 = vmatpush1.bf16.msra.mxu1 %v3995_v5  ;;  %v4001_v13 = vld [vmem:[%s4682_s14 + $0x80] ss:$16 sps:$4 sm:$0xff]   ;;  %v5099_v7 = vld [vmem:[%s5498_s28 + $0x88] sm:$0xff]  }
 0x66f   : > { %v1870_v29 = vpack.c.bf16 %v1868_v28, %v1867_v23  ;;  %2289 = vmatprep.subr.bf16.mxu1 %v4003_v9  ;;  %v4010_v23 = vld [vmem:[%s4682_s14 + $0xa8] ss:$16 sps:$4 sm:$0xff]   ;;  %v4013_v27 = vld [vmem:[%s4682_s14 + $0xc0] ss:$16 sps:$4 sm:$0xff]  }
 0x670   : > { %v1869_v11 = vpack.c.bf16 %v1866_v12, %v1865_v25  ;;  %v4018_v25 = vld [vmem:[%s4682_s14 + $0xcc] ss:$16 sps:$4 sm:$0xff]   ;;  %v4016_v28 = vld [vmem:[%s4682_s14 + $0xc8] ss:$16 sps:$4 sm:$0xff]   ;;  %v4021_v12 = vld [vmem:[%s4682_s14 + $0xe4] ss:$16 sps:$4 sm:$0xff]  }
 0x671   : > { %v4034_v5 = vld [vmem:[%s5498_s28 + $0x10] sm:$0xff]  }
 0x672   : > { %3669 = vmatprep.mubr.bf16.mxu0 %v1869_v11  ;;  %2290 = vmatpush1.bf16.msra.mxu1 %v4001_v13  ;;  %v4019_v11 = vld [vmem:[%s4682_s14 + $0xe0] ss:$16 sps:$4 sm:$0xff]   ;;  %v4038_v13 = vld [vmem:[%s5498_s28 + $0x18] sm:$0xff]  }
 0x673   : > { %3670 = vmatmul.mubr.bf16.vlgmr.msra.gmra.mrb[12].mxu0 %v1870_v29  ;;  %2291 = vmatprep.subr.bf16.mxu1 %v4009_v16  ;;  %v4024_v29 = vld [vmem:[%s4682_s14 + $0xec] ss:$16 sps:$4 sm:$0xff]   ;;  %v5108_v9 = vld [vmem:[%s5498_s28 + $0x90] sm:$0xff]  }
 0x674   : > { %2335 = vmatpush1.bf16.msra.mxu0 %v3980_v37  ;;  %v5118_v16 = vld [vmem:[%s5498_s28 + $0x98] sm:$0xff]  }
 0x675   : > { %2336 = vmatprep.subr.bf16.mxu0 %v3988_v39 }
 0x676   : > { %2292 = vmatpush1.bf16.msra.mxu1 %v4007_v19  ;;  %v4042_v19 = vld [vmem:[%s5498_s28 + $0x20] sm:$0xff]  }
 0x677   : > { %2293 = vmatprep.subr.bf16.mxu1 %v4015_v24  ;;  %v5128_v24 = vld [vmem:[%s5498_s28 + $0xa0] sm:$0xff]  }
 0x678   : > { %2337 = vmatpush1.bf16.msra.mxu0 %v3986_v4  ;;  %v3329_v4 = vld [vmem:[%s813_s30] ss:$0 sm:$0xff] }
 0x679   : > { %2338 = vmatprep.subr.bf16.mxu0 %v3994_v0  ;;  %v4029_v0 = vld [vmem:[%s5498_s28 + $0x48] sm:$0xff]  }
 0x67a   : > { %2294 = vmatpush1.bf16.msra.mxu1 %v4013_v27  ;;  %v4046_v27 = vld [vmem:[%s5498_s28 + $0x28] sm:$0xff]  }
 0x67b   : > { %2295 = vmatprep.subr.bf16.mxu1 %v4021_v12  ;;  %v5138_v12 = vld [vmem:[%s5498_s28 + $0xa8] sm:$0xff]  }
 0x67c   : > { %2339 = vmatpush1.bf16.msra.mxu0 %v3992_v1  ;;  %v5095_v1 = vld [vmem:[%s5498_s28 + $0xc8] sm:$0xff]  }
 0x67d   : > { %2340 = vmatprep.subr.bf16.mxu0 %v4000_v18  ;;  %v4033_v18 = vld [vmem:[%s5498_s28 + $0x50] sm:$0xff]  }
 0x67e   : > { %2296 = vmatpush1.bf16.msra.mxu1 %v4019_v11  ;;  %v4050_v11 = vld [vmem:[%s5498_s28 + $0x30] sm:$0xff]  }
 0x680   : > { %2341 = vmatpush1.bf16.msra.mxu0 %v3998_v17  ;;  %v5105_v17 = vld [vmem:[%s5498_s28 + $0xd0] sm:$0xff]  }
 0x681   : > { %2342 = vmatprep.subr.bf16.mxu0 %v4006_v10  ;;  %v4037_v10 = vld [vmem:[%s5498_s28 + $0x58] sm:$0xff]  }
 0x684   : > { %2343 = vmatpush1.bf16.msra.mxu0 %v4004_v3  ;;  %v5115_v3 = vld [vmem:[%s5498_s28 + $0xd8] sm:$0xff]  }
 0x685   : > { %2344 = vmatprep.subr.bf16.mxu0 %v4012_v2  ;;  %v4041_v2 = vld [vmem:[%s5498_s28 + $0x60] sm:$0xff]  }
 0x688   : > { %2345 = vmatpush1.bf16.msra.mxu0 %v4010_v23  ;;  %v5125_v23 = vld [vmem:[%s5498_s28 + $0xe0] sm:$0xff]  }
 0x689   : > { %2346 = vmatprep.subr.bf16.mxu0 %v4018_v25  ;;  %v4045_v25 = vld [vmem:[%s5498_s28 + $0x68] sm:$0xff]  }
 0x68c   : > { %2347 = vmatpush1.bf16.msra.mxu0 %v4016_v28  ;;  %v5135_v28 = vld [vmem:[%s5498_s28 + $0xe8] sm:$0xff]  }
 0x68d   : > { %2348 = vmatprep.subr.bf16.mxu0 %v4024_v29  ;;  %v4049_v29 = vld [vmem:[%s5498_s28 + $0x70] sm:$0xff]  }
 0x746   : > { %v3671_v20 = vpop.f32.mrb[12].mxu0 }
 0x747   : > { %v1969_v31 = vpop.f32.mrb[13].mxu0  ;;  %v1986_v61 = vadd.f32 %v4123_v21, %v3671_v20  ;;  %v4022_v20 = vld [vmem:[%s4682_s14 + $0xe8] ss:$16 sps:$4 sm:$0xff]  }
 0x748   : > { %v1984_v48 = vadd.f32 %v4121_v45, %v1969_v31  ;;  %v3672_v51 = vpop.f32.mrb[14].mxu0  ;;  %2349 = vmatpush1.bf16.msra.mxu0 %v4022_v20  ;;  %v5145_v20 = vld [vmem:[%s5498_s28 + $0xf0] sm:$0xff]  }
 0x749   : > { %v1972_v53 = vpop.f32.mrb[15].mxu0  ;;  %v5013_v30 = vadd.f32 %v3327_v26, %v1986_v61  ;;  %v1987_v33 = vadd.f32 %v4124_v32, %v3672_v51  ;;  %3505 = vmatprep.subr.bf16.mxu0 %v4027_v63 }
 0x74a   : > { %v5007_v55 = vadd.f32 %v3327_v26, %v1984_v48  ;;  %v1985_v59 = vadd.f32 %v4122_v57, %v1972_v53 }
 0x74b   : > { %v5016_v34 = vadd.f32 %v3327_v26, %v1987_v33 }
 0x74c   : > { %2001 = vadd.xlane.f32.xlu1 %v5007_v55  ;;  %v5010_v22 = vadd.f32 %v3327_v26, %v1985_v59  ;;  %v4328_v26 = vmov 0  }
 0x74d   : > { %2313 = vmatprep.mubr.bf16.mxu1 %v4328_v26  ;;  %2366 = vmatprep.mubr.bf16.mxu0 %v4328_v26 }
 0x750   : > { %2003 = vadd.xlane.f32.xlu1 %v5010_v22 }
 0x754   : > { %2005 = vadd.xlane.f32.xlu1 %v5013_v30 }
 0x758   : > { %2007 = vadd.xlane.f32.xlu1 %v5016_v34 }
 0x7d9   : > { %v2002_v41 = vpop.xlane.xlu1 %2001 }
 0x7da   : > { %v2009_v42 = vmul.f32 0.0078125, %v2002_v41 }
 0x7dc   : > { %v5028_v43 = vsub.f32 %v5007_v55, %v2009_v42 }
 0x7dd   : > { %v2004_v15 = vpop.xlane.xlu1 %2003 }
 0x7de   : > { %v2010_v44 = vmul.f32 0.0078125, %v2004_v15  ;;  %v2017_v14 = vmul.f32 %v5028_v43, %v5028_v43 }
 0x7e0   : > { %v5033_v46 = vsub.f32 %v5010_v22, %v2010_v44  ;;  %2021 = vadd.xlane.f32.xlu1 %v2017_v14 }
 0x7e1   : > { %v2006_v47 = vpop.xlane.xlu1 %2005 }
 0x7e2   : > { %v2011_v49 = vmul.f32 0.0078125, %v2006_v47  ;;  %v2018_v50 = vmul.f32 %v5033_v46, %v5033_v46 }
 0x7e4   : > { %v5038_v52 = vsub.f32 %v5013_v30, %v2011_v49  ;;  %2023 = vadd.xlane.f32.xlu1 %v2018_v50 }
 0x7e5   : > { %v2008_v54 = vpop.xlane.xlu1 %2007 }
 0x7e6   : > { %v2012_v56 = vmul.f32 0.0078125, %v2008_v54  ;;  %v2019_v58 = vmul.f32 %v5038_v52, %v5038_v52 }
 0x7e8   : > { %v5043_v60 = vsub.f32 %v5016_v34, %v2012_v56  ;;  %2025 = vadd.xlane.f32.xlu1 %v2019_v58 }
 0x7ea   : > { %v2020_v62 = vmul.f32 %v5043_v60, %v5043_v60 }
 0x7ec   : > { %2027 = vadd.xlane.f32.xlu0 %v2020_v62  ;;  %v4026_v62 = vld [vmem:[%s5498_s28] sm:$0xff]  }
 0x86d   : > { %v2022_v31 = vpop.xlane.xlu1 %2021 }
 0x86e   : > { %v2029_v45 = vmul.f32 0.0078125, %v2022_v31  ;;  %v4053_v31 = vld [vmem:[%s5498_s28 + $0x78] sm:$0xff]  }
 0x870   : > { %v2033_v48 = vadd.f32 1e-05, %v2029_v45  ;;  %v4054_v45 = vld [vmem:[%s5498_s28 + $0x38] sm:$0xff]  }
 0x871   : > { %v2024_v51 = vpop.xlane.xlu1 %2023 }
 0x872   : > { %4081 = vrsqrt.f32 %v2033_v48  ;;  %v2030_v53 = vmul.f32 0.0078125, %v2024_v51  ;;  %v5155_v48 = vld [vmem:[%s5498_s28 + $0xf8] sm:$0xff]  }
 0x873   : > { %v5158_v51 = vld [vmem:[%s5498_s28 + $0xb8] sm:$0xff]  }
 0x874   : > { %v2034_v57 = vadd.f32 1e-05, %v2030_v53  ;;  %v2101_v53 = vlaneseq }
 0x875   : > { %v2026_v59 = vpop.xlane.xlu1 %2025 }
 0x876   : > { %4083 = vrsqrt.f32 %v2034_v57  ;;  %v2031_v21 = vmul.f32 0.0078125, %v2026_v59  ;;  %v2102_v57 = vshrl.u32 %v2101_v53, 7 }
 0x878   : > { %v2035_v61 = vadd.f32 1e-05, %v2031_v21  ;;  %v2103_v59 = vsub.s32 0, %v2102_v57  ;;  %v2111_v21 = vsub.s32 2, %v2102_v57 }
 0x879   : > { %v2028_v32 = vpop.xlane.xlu0 %2027 }
 0x87a   : > { %4085 = vrsqrt.f32 %v2035_v61  ;;  %v2032_v33 = vmul.f32 0.0078125, %v2028_v32  ;;  %v2099_v61 = vld [vmem:[%s4687_s21] sm:$0xf]  ;;  %v2107_v32 = vsub.s32 1, %v2102_v57 }
 0x87c   : > { %v4082_v35 = vpop.eup %4081  ;;  %v2036_v36 = vadd.f32 1e-05, %v2032_v33  ;;  %v2115_v33 = vsub.s32 3, %v2102_v57 }
 0x87d   : > { %v2041_v37 = vmul.f32 %v4082_v35, %v5028_v43  ;;  %v5163_v35 = vrot.slane %v2099_v61, %v2103_v59 }
 0x87e   : > { %4087 = vrsqrt.f32 %v2036_v36  ;;  %v5165_v36 = vrot.slane %v2099_v61, %v2111_v21 }
 0x87f   : > { %v2051_v40 = vmul.f32 %v3328_v38, %v2041_v37  ;;  %v5167_v37 = vrot.slane %v2099_v61, %v2107_v32 }
 0x880   : > { %v4084_v6 = vpop.eup %4083 }
 0x881   : > { %v2042_v39 = vmul.f32 %v4084_v6, %v5033_v46  ;;  %v2061_v15 = vadd.f32 %v3329_v4, %v2051_v40 }
 0x883   : > { %v2052_v41 = vmul.f32 %v3328_v38, %v2042_v39 }
 0x884   : > { %v4086_v42 = vpop.eup %4085 }
 0x885   : > { %v2062_v44 = vadd.f32 %v3329_v4, %v2052_v41  ;;  %v2043_v43 = vmul.f32 %v4086_v42, %v5038_v52  ;;  %v4025_v52 = vld [vmem:[%s5498_s28 + $0x40] sm:$0xff]  }
 0x886   : > { %3477 = vmatprep.subr.bf16.mxu1 %v4025_v52 }
 0x887   : > { %v2065_v14 = vpack.c.bf16 %v2062_v44, %v2061_v15  ;;  %v2053_v49 = vmul.f32 %v3328_v38, %v2043_v43 }
 0x888   : > { %v4088_v47 = vpop.eup %4087 }
 0x889   : > { %2314 = vmatmul.mubr.bf16.vlgmr.msra.gmra.mrb[12].mxu1 %v2065_v14  ;;  %2367 = vmatmul.mubr.bf16.vlgmr.msra.gmra.mrb[16].mxu0 %v2065_v14  ;;  %v2044_v46 = vmul.f32 %v4088_v47, %v5043_v60  ;;  %v2063_v54 = vadd.f32 %v3329_v4, %v2053_v49  ;;  %v5089_v60 = vld [vmem:[%s5498_s28 + $0x80] sm:$0xff]  }
 0x88a   : > { %2323 = vmatprep.mubr.bf16.mxu1 %v4328_v26  ;;  %2376 = vmatprep.mubr.bf16.mxu0 %v4328_v26  ;;  %v5148_v26 = vld [vmem:[%s5498_s28 + $0xb0] sm:$0xff]  }
 0x88b   : > { %v2054_v50 = vmul.f32 %v3328_v38, %v2044_v46  ;;  %3478 = vmatpush3.bf16.msra.mxu1 %v4026_v62  ;;  %3506 = vmatpush3.bf16.msra.mxu0 %v5089_v60  ;;  %v5169_v38 = vrot.slane %v2099_v61, %v2115_v33 }
 0x88c   : > { %3479 = vmatprep.subr.bf16.mxu1 %v4029_v0  ;;  %3507 = vmatprep.subr.bf16.mxu0 %v5095_v1 }
 0x88d   : > { %v2064_v56 = vadd.f32 %v3329_v4, %v2054_v50 }
 0x88f   : > { %v2066_v58 = vpack.c.bf16 %v2064_v56, %v2063_v54  ;;  %3480 = vmatpush3.bf16.msra.mxu1 %v4030_v8  ;;  %3508 = vmatpush3.bf16.msra.mxu0 %v5099_v7 }
 0x890   : > { %3481 = vmatprep.subr.bf16.mxu1 %v4033_v18  ;;  %3509 = vmatprep.subr.bf16.mxu0 %v5105_v17 }
 0x891   : > { %2324 = vmatmul.mubr.bf16.gmra.mrb[16].mxu1 %v2066_v58  ;;  %2377 = vmatmul.mubr.bf16.gmra.mrb[20].mxu0 %v2066_v58 }
 0x893   : > { %3482 = vmatpush3.bf16.msra.mxu1 %v4034_v5  ;;  %3510 = vmatpush3.bf16.msra.mxu0 %v5108_v9 }
 0x894   : > { %3483 = vmatprep.subr.bf16.mxu1 %v4037_v10  ;;  %3511 = vmatprep.subr.bf16.mxu0 %v5115_v3 }
 0x897   : > { %3484 = vmatpush3.bf16.msra.mxu1 %v4038_v13  ;;  %3512 = vmatpush3.bf16.msra.mxu0 %v5118_v16 }
 0x898   : > { %3485 = vmatprep.subr.bf16.mxu1 %v4041_v2  ;;  %3513 = vmatprep.subr.bf16.mxu0 %v5125_v23 }
 0x89b   : > { %3486 = vmatpush3.bf16.msra.mxu1 %v4042_v19  ;;  %3514 = vmatpush3.bf16.msra.mxu0 %v5128_v24 }
 0x89c   : > { %3487 = vmatprep.subr.bf16.mxu1 %v4045_v25  ;;  %3515 = vmatprep.subr.bf16.mxu0 %v5135_v28 }
 0x89f   : > { %3488 = vmatpush3.bf16.msra.mxu1 %v4046_v27  ;;  %3516 = vmatpush3.bf16.msra.mxu0 %v5138_v12 }
 0x8a0   : > { %3489 = vmatprep.subr.bf16.mxu1 %v4049_v29  ;;  %3517 = vmatprep.subr.bf16.mxu0 %v5145_v20 }
 0x8a3   : > { %3490 = vmatpush3.bf16.msra.mxu1 %v4050_v11  ;;  %3518 = vmatpush3.bf16.msra.mxu0 %v5148_v26 }
 0x8a4   : > { %3491 = vmatprep.subr.bf16.mxu1 %v4053_v31  ;;  %3519 = vmatprep.subr.bf16.mxu0 %v5155_v48 }
 0x8a7   : > { %3492 = vmatpush3.bf16.msra.mxu1 %v4054_v45  ;;  %3520 = vmatpush3.bf16.msra.mxu0 %v5158_v51 }
 0x8a8   : > { %3673 = vmatprep.subr.bf16.mxu1 %v4027_v63 }
 0x95c   : > { %v2315_v6 = vpop.f32.mrb[12].mxu1  ;;  %v2368_v39 = vpop.f32.mrb[16].mxu0 }
 0x95d   : > { %v5172_v40 = vadd.f32 %v2315_v6, %v5163_v35  ;;  %v5175_v4 = vadd.f32 %v2368_v39, %v5165_v36  ;;  %v2317_v41 = vpop.f32.mrb[13].mxu1  ;;  %v2370_v42 = vpop.f32.mrb[17].mxu0 }
 0x95e   : > { %v5178_v15 = vadd.f32 %v2317_v41, %v5167_v37  ;;  %v5181_v44 = vadd.f32 %v2370_v42, %v5169_v38  ;;  %v2319_v43 = vpop.f32.mrb[14].mxu1  ;;  %v2372_v14 = vpop.f32.mrb[18].mxu0 }
 0x95f   : > { %v2387_v47 = vmul.f32 %v5172_v40, %v5172_v40  ;;  %v2389_v46 = vmul.f32 %v5175_v4, %v5175_v4  ;;  %v5188_v49 = vadd.f32 %v2319_v43, %v5163_v35  ;;  %v5191_v50 = vadd.f32 %v2372_v14, %v5165_v36  ;;  %v2321_v54 = vpop.f32.mrb[15].mxu1  ;;  %v2374_v56 = vpop.f32.mrb[19].mxu0 }
 0x960   : > { %v2388_v58 = vmul.f32 %v5178_v15, %v5178_v15  ;;  %v2390_v52 = vmul.f32 %v5181_v44, %v5181_v44  ;;  %v5198_v62 = vadd.f32 %v2321_v54, %v5167_v37  ;;  %v5201_v63 = vadd.f32 %v2374_v56, %v5169_v38 }
 0x961   : > { %v2403_v0 = vmul.f32 %v2387_v47, %v5172_v40  ;;  %v2405_v8 = vmul.f32 %v2389_v46, %v5175_v4  ;;  %v2391_v18 = vmul.f32 %v5188_v49, %v5188_v49  ;;  %v2393_v5 = vmul.f32 %v5191_v50, %v5191_v50 }
 0x962   : > { %v2404_v10 = vmul.f32 %v2388_v58, %v5178_v15  ;;  %v2406_v13 = vmul.f32 %v2390_v52, %v5181_v44  ;;  %v2392_v2 = vmul.f32 %v5198_v62, %v5198_v62  ;;  %v2394_v19 = vmul.f32 %v5201_v63, %v5201_v63 }
 0x963   : > { %v2419_v25 = vmul.f32 0.044715, %v2403_v0  ;;  %v2421_v27 = vmul.f32 0.044715, %v2405_v8  ;;  %v2407_v29 = vmul.f32 %v2391_v18, %v5188_v49  ;;  %v2409_v11 = vmul.f32 %v2393_v5, %v5191_v50 }
 0x964   : > { %v2420_v31 = vmul.f32 0.044715, %v2404_v10  ;;  %v2422_v45 = vmul.f32 0.044715, %v2406_v13  ;;  %v2408_v53 = vmul.f32 %v2392_v2, %v5198_v62  ;;  %v2410_v57 = vmul.f32 %v2394_v19, %v5201_v63  ;;  %v2325_v59 = vpop.f32.mrb[16].mxu1  ;;  %v2378_v21 = vpop.f32.mrb[20].mxu0 }
 0x965   : > { %v2435_v61 = vadd.f32 %v2419_v25, %v5172_v40  ;;  %v2437_v32 = vadd.f32 %v2421_v27, %v5175_v4  ;;  %v2423_v33 = vmul.f32 0.044715, %v2407_v29  ;;  %v2425_v6 = vmul.f32 0.044715, %v2409_v11  ;;  %v2327_v39 = vpop.f32.mrb[17].mxu1  ;;  %v2380_v41 = vpop.f32.mrb[21].mxu0 }
 0x966   : > { %v2436_v42 = vadd.f32 %v2420_v31, %v5178_v15  ;;  %v2438_v43 = vadd.f32 %v2422_v45, %v5181_v44  ;;  %v2424_v14 = vmul.f32 0.044715, %v2408_v53  ;;  %v2426_v47 = vmul.f32 0.044715, %v2410_v57  ;;  %v2329_v46 = vpop.f32.mrb[18].mxu1  ;;  %v2382_v54 = vpop.f32.mrb[22].mxu0 }
 0x967   : > { %v2451_v56 = vmul.f32 0.7978846, %v2435_v61  ;;  %v2453_v58 = vmul.f32 0.7978846, %v2437_v32  ;;  %v2439_v52 = vadd.f32 %v2423_v33, %v5188_v49  ;;  %v2441_v0 = vadd.f32 %v2425_v6, %v5191_v50  ;;  %v2331_v8 = vpop.f32.mrb[19].mxu1  ;;  %v2384_v18 = vpop.f32.mrb[23].mxu0 }
 0x968   : > { %v2452_v5 = vmul.f32 0.7978846, %v2436_v42  ;;  %v2454_v10 = vmul.f32 0.7978846, %v2438_v43  ;;  %v2440_v13 = vadd.f32 %v2424_v14, %v5198_v62  ;;  %v2442_v2 = vadd.f32 %v2426_v47, %v5201_v63 }
 0x969   : > { %4089 = vtanh.f32 %v2451_v56  ;;  %v2455_v19 = vmul.f32 0.7978846, %v2439_v52  ;;  %v2457_v25 = vmul.f32 0.7978846, %v2441_v0  ;;  %v5228_v27 = vadd.f32 %v2325_v59, %v5163_v35 }
 0x96a   : > { %4091 = vtanh.f32 %v2453_v58  ;;  %v2456_v29 = vmul.f32 0.7978846, %v2440_v13  ;;  %v2458_v11 = vmul.f32 0.7978846, %v2442_v2  ;;  %v5231_v31 = vadd.f32 %v2378_v21, %v5165_v36 }
 0x96b   : > { %4093 = vtanh.f32 %v2452_v5  ;;  %v2395_v45 = vmul.f32 %v5228_v27, %v5228_v27  ;;  %v5236_v53 = vadd.f32 %v2327_v39, %v5167_v37  ;;  %v5239_v57 = vadd.f32 %v2380_v41, %v5169_v38 }
 0x96c   : > { %4095 = vtanh.f32 %v2454_v10  ;;  %v2397_v59 = vmul.f32 %v5231_v31, %v5231_v31  ;;  %v5244_v61 = vadd.f32 %v2329_v46, %v5163_v35  ;;  %v5247_v21 = vadd.f32 %v2382_v54, %v5165_v36 }
 0x96d   : > { %4097 = vtanh.f32 %v2455_v19  ;;  %v2411_v32 = vmul.f32 %v2395_v45, %v5228_v27  ;;  %v2396_v33 = vmul.f32 %v5236_v53, %v5236_v53  ;;  %v2398_v6 = vmul.f32 %v5239_v57, %v5239_v57 }
 0x96e   : > { %4099 = vtanh.f32 %v2457_v25  ;;  %v2413_v39 = vmul.f32 %v2397_v59, %v5231_v31  ;;  %v2399_v41 = vmul.f32 %v5244_v61, %v5244_v61  ;;  %v2401_v35 = vmul.f32 %v5247_v21, %v5247_v21 }
 0x96f   : > { %4101 = vtanh.f32 %v2456_v29  ;;  %v2427_v36 = vmul.f32 0.044715, %v2411_v32  ;;  %v2412_v42 = vmul.f32 %v2396_v33, %v5236_v53  ;;  %v2414_v43 = vmul.f32 %v2398_v6, %v5239_v57 }
 0x970   : > { %4103 = vtanh.f32 %v2458_v11  ;;  %v2429_v14 = vmul.f32 0.044715, %v2413_v39  ;;  %v2415_v47 = vmul.f32 %v2399_v41, %v5244_v61  ;;  %v2417_v46 = vmul.f32 %v2401_v35, %v5247_v21 }
 0x971   : > { %v2443_v54 = vadd.f32 %v2427_v36, %v5228_v27  ;;  %v2428_v56 = vmul.f32 0.044715, %v2412_v42  ;;  %v2430_v58 = vmul.f32 0.044715, %v2414_v43  ;;  %v5265_v52 = vadd.f32 %v2331_v8, %v5167_v37 }
 0x972   : > { %v2445_v0 = vadd.f32 %v2429_v14, %v5231_v31  ;;  %v2431_v5 = vmul.f32 0.044715, %v2415_v47  ;;  %v2433_v10 = vmul.f32 0.044715, %v2417_v46  ;;  %v5269_v13 = vadd.f32 %v2384_v18, %v5169_v38 }
 0x973   : > { %v4090_v2 = vpop.eup %4089  ;;  %v2459_v19 = vmul.f32 0.7978846, %v2443_v54  ;;  %v2444_v25 = vadd.f32 %v2428_v56, %v5236_v53  ;;  %v2446_v29 = vadd.f32 %v2430_v58, %v5239_v57  ;;  %v2400_v11 = vmul.f32 %v5265_v52, %v5265_v52 }
 0x974   : > { %v4092_v45 = vpop.eup %4091  ;;  %v2483_v59 = vadd.f32 1.0, %v4090_v2  ;;  %v2461_v37 = vmul.f32 0.7978846, %v2445_v0  ;;  %v2447_v8 = vadd.f32 %v2431_v5, %v5244_v61  ;;  %v2449_v32 = vadd.f32 %v2433_v10, %v5247_v21 }
 0x975   : > { %v4094_v33 = vpop.eup %4093  ;;  %v2485_v6 = vadd.f32 1.0, %v4092_v45  ;;  %4105 = vtanh.f32 %v2459_v19  ;;  %v2460_v38 = vmul.f32 0.7978846, %v2444_v25  ;;  %v2462_v18 = vmul.f32 0.7978846, %v2446_v29 }
 0x976   : > { %v4096_v39 = vpop.eup %4095  ;;  %v2499_v41 = vmul.f32 0.5, %v2483_v59  ;;  %4107 = vtanh.f32 %v2461_v37  ;;  %v2463_v35 = vmul.f32 0.7978846, %v2447_v8  ;;  %v2465_v36 = vmul.f32 0.7978846, %v2449_v32 }
 0x977   : > { %v4098_v42 = vpop.eup %4097  ;;  %v2501_v43 = vmul.f32 0.5, %v2485_v6  ;;  %4109 = vtanh.f32 %v2460_v38  ;;  %v2416_v14 = vmul.f32 %v2400_v11, %v5265_v52  ;;  %v2402_v47 = vmul.f32 %v5269_v13, %v5269_v13 }
 0x978   : > { %v4100_v46 = vpop.eup %4099  ;;  %v2515_v54 = vmul.f32 %v2499_v41, %v5172_v40  ;;  %v2487_v56 = vadd.f32 1.0, %v4098_v42  ;;  %4111 = vtanh.f32 %v2462_v18  ;;  %v2484_v58 = vadd.f32 1.0, %v4094_v33 }
 0x979   : > { %v4102_v0 = vpop.eup %4101  ;;  %v2517_v5 = vmul.f32 %v2501_v43, %v5175_v4  ;;  %v2489_v10 = vadd.f32 1.0, %v4100_v46  ;;  %4113 = vtanh.f32 %v2463_v35  ;;  %v2432_v2 = vmul.f32 0.044715, %v2416_v14 }
 0x97a   : > { %v4104_v19 = vpop.eup %4103  ;;  %v2503_v25 = vmul.f32 0.5, %v2487_v56  ;;  %4115 = vtanh.f32 %v2465_v36  ;;  %v2418_v29 = vmul.f32 %v2402_v47, %v5269_v13  ;;  %v2488_v11 = vadd.f32 1.0, %v4102_v0 }
 0x97b   : > { %v2505_v45 = vmul.f32 0.5, %v2489_v10  ;;  %v2448_v59 = vadd.f32 %v2432_v2, %v5265_v52  ;;  %v2500_v37 = vmul.f32 0.5, %v2484_v58  ;;  %v2486_v40 = vadd.f32 1.0, %v4096_v39 }
 0x97c   : > { %v2519_v8 = vmul.f32 %v2503_v25, %v5188_v49  ;;  %v2434_v32 = vmul.f32 0.044715, %v2418_v29  ;;  %v2504_v33 = vmul.f32 0.5, %v2488_v11  ;;  %v2490_v6 = vadd.f32 1.0, %v4104_v19 }
 0x97d   : > { %v2521_v4 = vmul.f32 %v2505_v45, %v5191_v50  ;;  %v2464_v38 = vmul.f32 0.7978846, %v2448_v59  ;;  %v2516_v18 = vmul.f32 %v2500_v37, %v5178_v15  ;;  %v2502_v41 = vmul.f32 0.5, %v2486_v40 }
 0x97e   : > { %v2531_v35 = vpack.c.bf16 %v2519_v8, %v2515_v54  ;;  %v2450_v36 = vadd.f32 %v2434_v32, %v5269_v13  ;;  %v2520_v42 = vmul.f32 %v2504_v33, %v5198_v62  ;;  %v2506_v43 = vmul.f32 0.5, %v2490_v6 }
 0x97f   : > { %v4106_v14 = vpop.eup %4105  ;;  %v2533_v47 = vpack.c.bf16 %v2521_v4, %v2517_v5  ;;  %4117 = vtanh.f32 %v2464_v38  ;;  %v2518_v49 = vmul.f32 %v2502_v41, %v5181_v44 }
 0x980   : > { %v4108_v39 = vpop.eup %4107  ;;  %v2466_v46 = vmul.f32 0.7978846, %v2450_v36  ;;  %v2532_v56 = vpack.c.bf16 %v2520_v42, %v2516_v18  ;;  %v2522_v50 = vmul.f32 %v2506_v43, %v5201_v63  ;;  %v2491_v58 = vadd.f32 1.0, %v4106_v14 }
 0x981   : > { %v4110_v0 = vpop.eup %4109  ;;  %v2493_v15 = vadd.f32 1.0, %v4108_v39 }
 0x982   : > { %v4112_v10 = vpop.eup %4111  ;;  %4119 = vtanh.f32 %v2466_v46  ;;  %2827 = vmatprep.mubr.bf16.mxu1 %v2532_v56  ;;  %v2534_v54 = vpack.c.bf16 %v2522_v50, %v2518_v49  ;;  %v2507_v44 = vmul.f32 0.5, %v2491_v58  ;;  %v2492_v63 = vadd.f32 1.0, %v4110_v0 }
 0x983   : > { %v4114_v2 = vpop.eup %4113  ;;  %2828 = vmatmul.mubr.bf16.vlgmr.msra.gmra.mrb[20].mxu1 %v2531_v35  ;;  %v2509_v19 = vmul.f32 0.5, %v2493_v15  ;;  %v2494_v8 = vadd.f32 1.0, %v4112_v10 }
 0x984   : > { %v4116_v62 = vpop.eup %4115  ;;  %2876 = vmatprep.mubr.bf16.mxu0 %v2534_v54  ;;  %3681 = vmatpush3.bf16.msra.mxu1 %v5089_v60  ;;  %v2495_v5 = vadd.f32 1.0, %v4114_v2  ;;  %v2523_v45 = vmul.f32 %v2507_v44, %v5228_v27  ;;  %v2508_v33 = vmul.f32 0.5, %v2492_v63 }
 0x985   : > { %v2497_v25 = vadd.f32 1.0, %v4116_v62  ;;  %2877 = vmatmul.mubr.bf16.vlgmr.msra.gmra.mrb[24].mxu0 %v2533_v47  ;;  %3674 = vmatprep.subr.bf16.mxu1 %v5095_v1  ;;  %v2525_v40 = vmul.f32 %v2509_v19, %v5231_v31  ;;  %v2510_v27 = vmul.f32 0.5, %v2494_v8 }
 0x986   : > { %v2511_v29 = vmul.f32 0.5, %v2495_v5 }
 0x987   : > { %v2513_v11 = vmul.f32 0.5, %v2497_v25 }
 0x988   : > { %3682 = vmatpush3.bf16.msra.mxu1 %v5099_v7  ;;  %v2527_v59 = vmul.f32 %v2511_v29, %v5244_v61  ;;  %v2524_v61 = vmul.f32 %v2508_v33, %v5236_v53 }
 0x989   : > { %v4118_v37 = vpop.eup %4117  ;;  %v2529_v60 = vmul.f32 %v2513_v11, %v5247_v21  ;;  %3675 = vmatprep.subr.bf16.mxu1 %v5105_v17  ;;  %v2526_v17 = vmul.f32 %v2510_v27, %v5239_v57 }
 0x98a   : > { %v2496_v32 = vadd.f32 1.0, %v4118_v37  ;;  %v2535_v1 = vpack.c.bf16 %v2527_v59, %v2523_v45 }
 0x98b   : > { %v2537_v6 = vpack.c.bf16 %v2529_v60, %v2525_v40 }
 0x98c   : > { %v4120_v4 = vpop.eup %4119  ;;  %v2512_v38 = vmul.f32 0.5, %v2496_v32  ;;  %3683 = vmatpush3.bf16.msra.mxu1 %v5108_v9 }
 0x98d   : > { %v2498_v7 = vadd.f32 1.0, %v4120_v4  ;;  %3676 = vmatprep.subr.bf16.mxu1 %v5115_v3 }
 0x98e   : > { %v2528_v31 = vmul.f32 %v2512_v38, %v5265_v52 }
 0x98f   : > { %v2514_v21 = vmul.f32 0.5, %v2498_v7 }
 0x990   : > { %v2536_v18 = vpack.c.bf16 %v2528_v31, %v2524_v61  ;;  %3684 = vmatpush3.bf16.msra.mxu1 %v5118_v16 }
 0x991   : > { %v2530_v41 = vmul.f32 %v2514_v21, %v5269_v13  ;;  %3677 = vmatprep.subr.bf16.mxu1 %v5125_v23 }
 0x992   : > { %2835 = vmatprep.mubr.bf16.mxu1 %v2536_v18 }
 0x993   : > { %2836 = vmatmul.mubr.bf16.gmra.mrb[24].mxu1 %v2535_v1  ;;  %v2538_v9 = vpack.c.bf16 %v2530_v41, %v2526_v17 }
 0x994   : > { %3685 = vmatpush3.bf16.msra.mxu1 %v5128_v24 }
 0x995   : > { %2884 = vmatprep.mubr.bf16.mxu1 %v2538_v9  ;;  %3678 = vmatprep.subr.bf16.mxu1 %v5135_v28 }
 0x998   : > { %3686 = vmatpush3.bf16.msra.mxu1 %v5138_v12 }
 0x999   : > { %3679 = vmatprep.subr.bf16.mxu1 %v5145_v20 }
 0x99c   : > { %3687 = vmatpush3.bf16.msra.mxu1 %v5148_v26  ;;  %v3394_v26 = vld [vmem:[%s825_s17] ss:$0 sm:$0xff]  ;;  %s5500_s17 = sld [smem:[#allocation37_spill]] (!%p3395_p1) }
 0x99d   : > { %3680 = vmatprep.subr.bf16.mxu1 %v5155_v48 }
 0x9a0   : > { %3688 = vmatpush3.bf16.msra.mxu1 %v5158_v51 }
 0x9a3   : > { %2885 = vmatmul.mubr.bf16.vlgmr.msra.gmra.mrb[28].mxu1 %v2537_v6 }
 0xa56   : > { %v3493_v3 = vpop.f32.mrb[20].mxu1 }
 0xa57   : > { %v3494_v16 = vpop.f32.mrb[21].mxu1 }
 0xa58   : > { %v3521_v23 = vpop.f32.mrb[24].mxu0  ;;  %v3495_v53 = vadd.f32 %v3494_v16, %v3493_v3  ;;  %v3496_v24 = vpop.f32.mrb[22].mxu1 }
 0xa59   : > { %v3522_v57 = vpop.f32.mrb[25].mxu0  ;;  %v3497_v52 = vpop.f32.mrb[23].mxu1 }
 0xa5a   : > { %v3523_v28 = vadd.f32 %v3522_v57, %v3521_v23  ;;  %v3524_v13 = vpop.f32.mrb[26].mxu0  ;;  %v3498_v12 = vadd.f32 %v3497_v52, %v3496_v24  ;;  %v3396_v23 = vld [vmem:[%s5500_s17] ss:$0 sm:$0xff] (!%p3395_p1) }
 0xa5b   : > { %v3525_v35 = vpop.f32.mrb[27].mxu0  ;;  %v3397_v24 = vld [vmem:[%s5501_s3] ss:$0 sm:$0xff] (!%p3395_p1) }
 0xa5c   : > { %v2879_v20 = vadd.f32 %v3523_v28, %v3495_v53  ;;  %v3526_v36 = vadd.f32 %v3525_v35, %v3524_v13 }
 0xa5e   : > { %v2893_v48 = vadd.f32 %v2879_v20, %v5007_v55  ;;  %v2882_v51 = vadd.f32 %v3526_v36, %v3498_v12 }
 0xa60   : > { %v2904_v42 = vadd.f32 %v3394_v26, %v2893_v48  ;;  %v2894_v43 = vadd.f32 %v2882_v51, %v5010_v22 }
 0xa62   : > { %2908 = vst [vmem:[#allocation2] sm:$0xff] %v2904_v42  ;;  %v2905_v14 = vadd.f32 %v3394_v26, %v2894_v43  ;;  %2918 = vadd.xlane.f32.xlu0 (!%p3395_p1), %v2904_v42 }
 0xa64   : > { %2909 = vst [vmem:[#allocation2 + $0x8] sm:$0xff] %v2905_v14 }
 0xa66   : > { %v3499_v47 = vpop.f32.mrb[24].mxu1  ;;  %2920 = vadd.xlane.f32.xlu0 (!%p3395_p1), %v2905_v14 }
 0xa67   : > { %v3500_v49 = vpop.f32.mrb[25].mxu1 }
 0xa68   : > { %v3501_v39 = vadd.f32 %v3500_v49, %v3499_v47  ;;  %v3502_v46 = vpop.f32.mrb[26].mxu1 }
 0xa69   : > { %v3503_v56 = vpop.f32.mrb[27].mxu1 }
 0xa6a   : > { %v3504_v50 = vadd.f32 %v3503_v56, %v3502_v46 }
 0xa76   : > { %v3527_v58 = vpop.f32.mrb[28].mxu1 }
 0xa77   : > { %v3528_v0 = vpop.f32.mrb[29].mxu1 }
 0xa78   : > { %v3529_v15 = vadd.f32 %v3528_v0, %v3527_v58  ;;  %v3530_v10 = vpop.f32.mrb[30].mxu1 }
 0xa79   : > { %v3531_v54 = vpop.f32.mrb[31].mxu1 }
 0xa7a   : > { %v2887_v2 = vadd.f32 %v3529_v15, %v3501_v39  ;;  %v3532_v55 = vadd.f32 %v3531_v54, %v3530_v10 }
 0xa7c   : > { %v2895_v62 = vadd.f32 %v2887_v2, %v5013_v30  ;;  %v2890_v5 = vadd.f32 %v3532_v55, %v3504_v50  ;;  %2915 = sbr.rel (%p3395_p1) target bundleno = 3004 (0xbbc), region = 108 }
 0xa7e   : > { %v2906_v22 = vadd.f32 %v3394_v26, %v2895_v62  ;;  %v2896_v44 = vadd.f32 %v2890_v5, %v5016_v34 }
 0xa80   : > { %2910 = vst [vmem:[#allocation2 + $0x10] sm:$0xff] %v2906_v22  ;;  %v2907_v19 = vadd.f32 %v3394_v26, %v2896_v44  ;;  %2922 = vadd.xlane.f32.xlu1 (!%p3395_p1), %v2906_v22 }
 0xa82   : > { %2911 = vst [vmem:[#allocation2 + $0x18] sm:$0xff] %v2907_v19 }
 0xa84   : > { %2924 = vadd.xlane.f32.xlu1 %v2907_v19 }
 0xaef   : > { %v2919_v25 = vpop.xlane.xlu0 %2918 }
 0xaf0   : > { %v2926_v29 = vmul.f32 0.0078125, %v2919_v25 }
 0xaf2   : > { %v2930_v45 = vsub.f32 %v2904_v42, %v2926_v29 }
 0xaf3   : > { %v2921_v59 = vpop.xlane.xlu0 %2920 }
 0xaf4   : > { %v2927_v40 = vmul.f32 0.0078125, %v2921_v59  ;;  %v2934_v34 = vmul.f32 %v2930_v45, %v2930_v45 }
 0xaf6   : > { %v2931_v8 = vsub.f32 %v2905_v14, %v2927_v40  ;;  %2938 = vadd.xlane.f32.xlu0 %v2934_v34 }
 0xaf8   : > { %v2935_v1 = vmul.f32 %v2931_v8, %v2931_v8 }
 0xafa   : > { %2940 = vadd.xlane.f32.xlu1 %v2935_v1 }
 0xb0d   : > { %v2923_v63 = vpop.xlane.xlu1 %2922 }
 0xb0e   : > { %v2928_v11 = vmul.f32 0.0078125, %v2923_v63 }
 0xb10   : > { %v2932_v30 = vsub.f32 %v2906_v22, %v2928_v11 }
 0xb11   : > { %v2925_v37 = vpop.xlane.xlu1 %2924 }
 0xb12   : > { %v2929_v60 = vmul.f32 0.0078125, %v2925_v37  ;;  %v2936_v33 = vmul.f32 %v2932_v30, %v2932_v30 }
 0xb14   : > { %v2933_v32 = vsub.f32 %v2907_v19, %v2929_v60  ;;  %2942 = vadd.xlane.f32.xlu0 %v2936_v33 }
 0xb16   : > { %v2937_v6 = vmul.f32 %v2933_v32, %v2933_v32 }
 0xb18   : > { %2944 = vadd.xlane.f32.xlu1 %v2937_v6 }
 0xb83   : > { %v2939_v4 = vpop.xlane.xlu0 %2938 }
 0xb84   : > { %v2946_v38 = vmul.f32 0.0078125, %v2939_v4 }
 0xb86   : > { %v2950_v7 = vadd.f32 1e-05, %v2946_v38 }
 0xb87   : > { %v2941_v27 = vpop.xlane.xlu1 %2940 }
 0xb88   : > { %4125 = vrsqrt.f32 %v2950_v7  ;;  %v2947_v31 = vmul.f32 0.0078125, %v2941_v27 }
 0xb8a   : > { %v2951_v18 = vadd.f32 1e-05, %v2947_v31 }
 0xb8c   : > { %4127 = vrsqrt.f32 %v2951_v18 }
 0xb92   : > { %v4126_v16 = vpop.eup %4125 }
 0xb93   : > { %v2958_v53 = vmul.f32 %v4126_v16, %v2930_v45 }
 0xb95   : > { %v2968_v57 = vmul.f32 %v3396_v23, %v2958_v53 }
 0xb96   : > { %v4128_v52 = vpop.eup %4127 }
 0xb97   : > { %v2978_v13 = vadd.f32 %v3397_v24, %v2968_v57  ;;  %v2959_v12 = vmul.f32 %v4128_v52, %v2931_v8 }
 0xb99   : > { %2982 = vst [vmem:[%s4693_s15] sm:$0xff] %v2978_v13  ;;  %v2969_v20 = vmul.f32 %v3396_v23, %v2959_v12 }
 0xb9b   : > { %v2979_v48 = vadd.f32 %v3397_v24, %v2969_v20 }
 0xb9d   : > { %2983 = vst [vmem:[%s4693_s15 + $0x8] sm:$0xff] %v2979_v48 }
 0xba1   : > { %v2943_v61 = vpop.xlane.xlu0 %2942 }
 0xba2   : > { %v2948_v21 = vmul.f32 0.0078125, %v2943_v61 }
 0xba4   : > { %v2952_v17 = vadd.f32 1e-05, %v2948_v21 }
 0xba5   : > { %v2945_v41 = vpop.xlane.xlu1 %2944 }
 0xba6   : > { %v2949_v9 = vmul.f32 0.0078125, %v2945_v41  ;;  %4129 = vrsqrt.f32 %v2952_v17 }
 0xba8   : > { %v2953_v3 = vadd.f32 1e-05, %v2949_v9 }
 0xbaa   : > { %4131 = vrsqrt.f32 %v2953_v3 }
 0xbb0   : > { %v4130_v28 = vpop.eup %4129 }
 0xbb1   : > { %v2960_v35 = vmul.f32 %v4130_v28, %v2932_v30 }
 0xbb3   : > { %v2970_v26 = vmul.f32 %v3396_v23, %v2960_v35 }
 0xbb4   : > { %v4132_v36 = vpop.eup %4131 }
 0xbb5   : > { %v2961_v51 = vmul.f32 %v4132_v36, %v2933_v32  ;;  %v2980_v42 = vadd.f32 %v3397_v24, %v2970_v26 }
 0xbb7   : > { %v2971_v43 = vmul.f32 %v3396_v23, %v2961_v51  ;;  %2984 = vst [vmem:[%s4693_s15 + $0x10] sm:$0xff] %v2980_v42 }
 0xbb9   : > { %v2981_v14 = vadd.f32 %v3397_v24, %v2971_v43 }
 0xbbb   : > { %2985 = vst [vmem:[%s4693_s15 + $0x18] sm:$0xff] %v2981_v14 }
 0xbbc PF: > { %s5502_s13 = sld [smem:[#allocation17_spill]]  ;;  %s5503_s0 = sld [smem:[#allocation13_spill]] }
 0xbbd   : > { %s5504_s22 = sld [smem:[#allocation25_spill]]  ;;  %s5505_s16 = sld [smem:[#allocation39_spill]] }
 0xbbe   : > { %s3000_s23 = sshll.u32 %s4693_s15, 4  ;;  %s4329_s21 = smov [#allocation8]   ;;  %s5341_s23 = int_to_ptr.vmem [resolvable:$true] %s3000_s23 }
 0xbbf   : > { %s4193_s30 = scalar_lea.vmem %s5341_s23, 512  ;;  %s4197_s29 = sshll.u32 %s4329_s21, 4  ;;  %s4198_s29 = int_to_ptr.vmem [resolvable:$false] %s4197_s29 }
 0xbc0   : > { %p4194_p10 = scmp.ne.s32.totalorder %s5341_s23, %s4193_s30  ;;  %s4199_s1 = scalar_lea.vmem %s4198_s29, 1024 }
 0xbc1   : > { %p4200_p13 = scmp.lt.s32.totalorder %s5341_s23, %s4198_s29  ;;  %p4201_p0 = scmp.lt.s32.totalorder %s4199_s1, %s4193_s30 }
 0xbc2   : > { %s3406_s2 = sshll.u32 %s5502_s13, 9  ;;  %s5506_s7 = sand.u32 1, %s5503_s0  }
 0xbc3   : > { %s5338_s27 = scalar_lea.hbm %s5505_s16, %s3406_s2  ;;  %s5345_s28 = scalar_lea.sflag [#allocation5], %s5506_s7 }
 0xbc4   : > { %p5507_p11 = scmp.ne.s32.totalorder %s5504_s22, 0  ;;  %p4202_p3 = por %p4201_p0, %p4200_p13 }
 0xbc6   : > { %p4195_p12 = pnand %p4194_p10, %p5507_p11 }
 0xbc8   : > { %p4196_p2 = pneg %p4195_p12 }
 0xbca   : > { %p4203_p6 = pnand %p4202_p3, %p4196_p2 }
 0xbcc   : > { %4206 = shalt.err (!%p4203_p6)
}
 0xbcd   : > { %s4207_s15 = scalar_lea.hbm %s5338_s27, 512  ;;  %s4211_s19 = scalar_lea.hbm %s5505_s16, 1024 }
 0xbce   : > { %p4208_p9 = scmp.ne.s32.totalorder %s5338_s27, %s4207_s15  ;;  %p4212_p5 = scmp.lt.u32.totalorder %s5338_s27, %s5505_s16 }
 0xbcf   : > { %p4213_p7 = scmp.lt.u32.totalorder %s4211_s19, %s4207_s15  ;;  %p4215_p10 = scmp.lt.u32.totalorder %s4207_s15, %s5338_s27 }
 0xbd0   : > { %p4209_p8 = pnand %p4208_p9, %p5507_p11 }
 0xbd1   : > { %p4214_p1 = por %p4213_p7, %p4212_p5 }
 0xbd2   : > { %p4210_p4 = pneg %p4209_p8 }
 0xbd3   : > { %p4216_p12 = por %p4215_p10, %p4214_p1 }
 0xbd5   : > { %p4217_p2 = pnand %p4216_p12, %p4210_p4 }
 0xbd7   : > { %4220 = shalt.err (!%p4217_p2)
}
 0xbd8   : > { %s4330_s13 = smov 128   ;;  %s4331_s0 = smov 8  }
 0xbd9   : > { %3697 = dma.vmem_to_hbm [thread:$0]  (%p5507_p11), %s5341_s23, 512, %s5338_s27, %s5345_s28, %s4330_s13, %s4330_s13, %s4331_s0  }
 0xbda PF: > { %s5508_s2 = sld [smem:[#allocation20_spill]]  ;;  %s5509_s20 = sld [smem:[#allocation12_spill]] }
 0xbdb   : > { %s5510_s14 = sld [smem:[#allocation26_spill]] }
 0xbe0   : > { %p3711_p13 = scmp.ge.s32.totalorder %s5508_s2, 2  ;;  %s3015_s7 = sand.u32 1, %s5509_s20  }
 0xbe1   : > { %p5511_p0 = scmp.ne.s32.totalorder %s5510_s14, 0  ;;  %s3016_s30 = scalar_lea.sflag [#allocation5], %s3015_s7 }
 0xbe3   : > { %p3707_p3 = pnand %p3711_p13, %p5511_p0 }
 0xbe5   : > { %4274 = dma.done.wait (!%p3707_p3), %s3016_s30, 512  }
 0xbe6   : > { %4276 = vsyncadd (!%p3707_p3), %s3016_s30, 4294966784  ;;  %s37_s2 = sadd.s32 1, %s5508_s2   ;;  %s5512_s27 = sld [smem:[#allocation13_spill]] }
 0xbe7   : > { %p34_p6 = scmp.ge.s32.totalorder %s37_s2, 6   ;;  %s5513_s28 = sld [smem:[#allocation14_spill]] }
 0xbe8   : > { %s5514_s29 = sld [smem:[#allocation24_spill]]  ;;  %s5515_s30 = sld [smem:[#allocation15_spill]] }
 0xbe9   : > { %s5516_s0 = sld [smem:[#allocation16_spill]]  ;;  %s5517_s19 = sld [smem:[#allocation23_spill]] }
 0xbea   : > { %s5518_s1 = sld [smem:[#allocation18_spill]]  ;;  %s5519_s20 = sld [smem:[#allocation19_spill]] }
 0xbeb   : > { %s5520_s21 = sld [smem:[#allocation21_spill]]  ;;  %s5521_s22 = sld [smem:[#allocation22_spill]] }
 0xbec   :  { %36 = sbr.rel (!%p34_p6) target bundleno = 24 (0x18), region = 195 }
 0xbf3   :  { %3021 = vsyncpa [#allocation4], 1 }
 0xbf4   :  { %3023 = vsyncpa [#allocation4 + $0x1], 1 }
 0xbf5   :  { %3024 = vsyncpa [#allocation7], 1 }
 0xbf6   :  { %3026 = vsyncpa [#allocation7 + $0x1], 1 }
 0xbf7   :  { %3027 = vsyncpa [#allocation5], 1 }
 0xbf8   :  { %3029 = vsyncpa [#allocation5 + $0x1], 1 }

</bundles_post_ra>
